<compile_context>
chip_gen: v7x
topology: tpu7x:2x2x1
jax: 0.10.0
libtpu: 0.0.40
codegen_flags: <defaults>
</compile_context>

<pallas_src>
import jax
import jax.numpy as jnp
from jax import lax
from jax.experimental import pallas as pl
from jax.experimental.pallas import tpu as pltpu

EPS = 1e-5      # PyTorch BatchNorm2d default eps
PAD = 128       # lane-aligned left halo (zero padding for the conv row shifts)
GAP = 128       # lane-aligned zero gap between images (and trailing right halo)


# ----------------------------- Pallas kernel --------------------------------
def _make_kernel(n, c_skip, c_deep, cout, h, w):
    hw = h * w
    cin = c_skip + c_deep
    rows = max(cin, cout)              # scratch rows
    S = hw + GAP                       # lane stride between images
    w_out = n * S - GAP                # conv/BN working lane width
    inv_cnt = 1.0 / float(n * hw)      # BatchNorm count (biased variance)

    def kernel(x2_ref, x1_ref, u_ref, w1_ref, w2_ref, bn_ref, msk_ref, o_ref, scr):
        # --- zero the halo + inter-image gaps ONCE; both convs reuse them ----
        zstrip = jnp.zeros((rows, GAP), jnp.bfloat16)
        scr[:, 0:PAD] = zstrip
        for i in range(n):
            scr[:, PAD + i * S + hw:PAD + (i + 1) * S] = zstrip

        # --- column-edge masks: precomputed in the wrapper, loaded once ------
        mask_l = msk_ref[0:1, :]                     # valid lanes for dx = -1
        mask_r = msk_ref[1:2, :]                     # valid lanes for dx = +1

        # --- bilinear x2 upsample (+ replicate pad): one bf16 MXU matmul -----
        x1u = jnp.dot(x1_ref[...].astype(jnp.bfloat16), u_ref[...],
                      preferred_element_type=jnp.float32)      # (n*c_deep, hw)

        # --- channel concat [x2, x1u]: aligned per-image stores --------------
        for i in range(n):
            off = PAD + i * S
            scr[0:c_skip, off:off + hw] = (
                x2_ref[i * c_skip:(i + 1) * c_skip, :].astype(jnp.bfloat16))
            scr[c_skip:cin, off:off + hw] = (
                x1u[i * c_deep:(i + 1) * c_deep, :].astype(jnp.bfloat16))

        def conv3x3(c_in, w_ref):
            # 3x3 conv (pad=1) as an accumulation over the 9 taps (no 9x im2col
            # buffer), grouped by kernel column so each edge mask multiplies once.
            def tap(dy, dx):
                d = (dy - 1) * w + (dx - 1)
                t = dy * 3 + dx
                sl = scr[0:c_in, PAD + d:PAD + d + w_out]        # bf16
                wt = w_ref[:, t * c_in:(t + 1) * c_in]           # bf16 (cout, c_in)
                return jnp.dot(wt, sl, preferred_element_type=jnp.float32)

            left = tap(0, 0) + tap(1, 0) + tap(2, 0)
            mid = tap(0, 1) + tap(1, 1) + tap(2, 1)
            right = tap(0, 2) + tap(1, 2) + tap(2, 2)
            return mid + mask_l * left + mask_r * right          # (cout, w_out) f32

        def bn_relu(acc, g, be):
            # Training-mode BatchNorm (per-channel batch stats, biased var) + ReLU.
            # Stats via exact f32 lane reductions over the valid image lanes only.
            s = jnp.zeros((cout, 1), jnp.float32)
            q = jnp.zeros((cout, 1), jnp.float32)
            for i in range(n):
                sl = acc[:, i * S:i * S + hw]
                s = s + jnp.sum(sl, axis=1, keepdims=True)
                q = q + jnp.sum(sl * sl, axis=1, keepdims=True)
            mean = s * inv_cnt
            var = q * inv_cnt - mean * mean
            scale = g * lax.rsqrt(var + EPS)
            shift = be - mean * scale
            return jnp.maximum(acc * scale + shift, 0.0)

        # --- conv1 -> BN -> ReLU (conv bias cancelled exactly by the BN mean) -
        y1 = bn_relu(conv3x3(cin, w1_ref), bn_ref[:, 0:1], bn_ref[:, 1:2])

        # --- feed y1 back through the same zero-gapped halo scratch ----------
        for i in range(n):
            off = PAD + i * S
            scr[0:cout, off:off + hw] = y1[:, i * S:i * S + hw].astype(jnp.bfloat16)

        y2 = bn_relu(conv3x3(cout, w2_ref), bn_ref[:, 2:3], bn_ref[:, 3:4])

        # --- output: (n*cout, hw) lane-dense slab == pure reshape of NCHW ----
        for i in range(n):
            o_ref[i * cout:(i + 1) * cout, :] = y2[:, i * S:i * S + hw]

    return kernel


# ------------------------- wrapper-side operator packing ---------------------
def _bilinear_x2_matrix(n_in):
    """(2*n_in, n_in) operator of nn.Upsample(scale_factor=2, bilinear, align_corners=True)."""
    n_out = 2 * n_in
    if n_in == 1:
        return jnp.ones((n_out, 1), jnp.float32)
    src = jnp.arange(n_out, dtype=jnp.float32) * (n_in - 1) / (n_out - 1)
    i0 = jnp.floor(src).astype(jnp.int32)
    i1 = jnp.minimum(i0 + 1, n_in - 1)
    f = src - i0.astype(jnp.float32)
    r = jnp.arange(n_out)
    m = jnp.zeros((n_out, n_in), jnp.float32)
    m = m.at[r, i0].add(1.0 - f)
    m = m.at[r, i1].add(f)
    return m


def _replicate_pad_matrix(n_in, lo, hi):
    """(n_in+lo+hi, n_in) operator of replicate ('edge') padding."""
    idx = jnp.clip(jnp.arange(n_in + lo + hi) - lo, 0, n_in - 1)
    return jnp.eye(n_in, dtype=jnp.float32)[idx]


def _pack_conv_weight(wt):
    """PyTorch (Cout, Cin, 3, 3) -> tap-major (Cout, 9*Cin) bf16 matrix."""
    co, ci = wt.shape[0], wt.shape[1]
    return jnp.transpose(wt, (0, 2, 3, 1)).reshape(co, 9 * ci).astype(jnp.bfloat16)


def up_forward(x1, x2, params):
    """Forward of `up` (bilinear=True, norm='batchnorm', training-mode stats).
    x1: (N, C1, h, w) deeper features; x2: (N, C2, 2h, 2w) skip. NCHW in/out."""
    n, c_deep, h_lo, w_lo = x1.shape
    _, c_skip, h, w = x2.shape
    cout = params['g1'].shape[0]
    hw = h * w
    hw_lo = h_lo * w_lo
    cin = c_skip + c_deep

    # static layout requirements of the halo / gap scheme
    assert PAD >= w + 1 and GAP >= w + 1, "halo/gap must cover one conv row shift (w+1)"
    # (hw % 128 == 0 keeps all image-slab stores lane-aligned; correctness holds regardless)

    S = hw + GAP
    w_out = n * S - GAP
    ws = PAD + n * S
    rows = max(cin, cout)

    # upsample(+replicate pad) folded into a single (hw_lo, hw) operator
    diff_h = h - 2 * h_lo                     # PyTorch diffX (height)
    diff_w = w - 2 * w_lo                     # PyTorch diffY (width)
    ry = _replicate_pad_matrix(2 * h_lo, diff_h // 2, diff_h - diff_h // 2) @ _bilinear_x2_matrix(h_lo)
    rx = _replicate_pad_matrix(2 * w_lo, diff_w // 2, diff_w - diff_w // 2) @ _bilinear_x2_matrix(w_lo)
    u = jnp.kron(ry, rx).T.astype(jnp.bfloat16)          # (hw_lo, hw)

    w1m = _pack_conv_weight(params['w1'])                # (cout, 9*cin)
    w2m = _pack_conv_weight(params['w2'])                # (cout, 9*cout)

    # consolidated per-channel BN params: one tiny VMEM tile
    bn = jnp.stack([params['g1'], params['be1'], params['g2'], params['be2']],
                   axis=1).astype(jnp.float32)           # (cout, 4)

    # hoisted column-edge masks (per output lane, batch-on-lanes coordinates)
    lane = jnp.arange(w_out)
    xcol = (lane % S) % w                                # x within the image slab
    masks = jnp.stack([(xcol >= 1).astype(jnp.float32),
                       (xcol <= w - 2).astype(jnp.float32)], axis=0)  # (2, w_out)

    kernel = _make_kernel(n, c_skip, c_deep, cout, h, w)
    vmem = pl.BlockSpec(memory_space=pltpu.MemorySpace.VMEM)

    out_flat = pl.pallas_call(
        kernel,
        out_shape=jax.ShapeDtypeStruct((n * cout, hw), jnp.float32),
        in_specs=[vmem] * 7,
        out_specs=vmem,
        scratch_shapes=[pltpu.VMEM((rows, ws), jnp.bfloat16)],
    )(x2.reshape(n * c_skip, hw).astype(jnp.float32),
      x1.reshape(n * c_deep, hw_lo).astype(jnp.float32),
      u, w1m, w2m, bn, masks)

    return out_flat.reshape(n, cout, h, w)


# -------------------------- pure-JAX reference --------------------------------
def _ref_upsample(x):
    n, c, h, w = x.shape

    def coords(n_in, n_out):
        src = jnp.arange(n_out, dtype=jnp.float32) * (n_in - 1) / (n_out - 1)
        i0 = jnp.floor(src).astype(jnp.int32)
        i1 = jnp.minimum(i0 + 1, n_in - 1)
        return src - i0.astype(jnp.float32), i0, i1

    fy, y0, y1 = coords(h, 2 * h)
    fx, x0, x1 = coords(w, 2 * w)
    rows = (x[:, :, y0, :] * (1 - fy)[None, None, :, None]
            + x[:, :, y1, :] * fy[None, None, :, None])
    return (rows[:, :, :, x0] * (1 - fx)[None, None, None, :]
            + rows[:, :, :, x1] * fx[None, None, None, :])


def ref_up_forward(x1, x2, params):
    x1u = _ref_upsample(x1)
    dh = x2.shape[2] - x1u.shape[2]
    dw = x2.shape[3] - x1u.shape[3]
    if dh or dw:
        x1u = jnp.pad(x1u, ((0, 0), (0, 0),
                            (dh // 2, dh - dh // 2),
                            (dw // 2, dw - dw // 2)), mode='edge')
    x = jnp.concatenate([x2, x1u], axis=1)

    def conv(v, wt, b):
        y = lax.conv_general_dilated(v, wt, (1, 1), 'SAME',
                                     dimension_numbers=('NCHW', 'OIHW', 'NCHW'),
                                     precision=lax.Precision.HIGHEST)
        return y + b[None, :, None, None]

    def bn_relu(v, g, be):
        mu = jnp.mean(v, axis=(0, 2, 3), keepdims=True)
        var = jnp.mean((v - mu) ** 2, axis=(0, 2, 3), keepdims=True)
        y = (v - mu) * lax.rsqrt(var + EPS) * g[None, :, None, None] + be[None, :, None, None]
        return jnp.maximum(y, 0.0)

    y = bn_relu(conv(x, params['w1'], params['b1']), params['g1'], params['be1'])
    return bn_relu(conv(y, params['w2'], params['b2']), params['g2'], params['be2'])


# ---------------------------------- main --------------------------------------
if __name__ == "__main__":
    key = jax.random.PRNGKey(0)
    ks = jax.random.split(key, 10)

    # up(in_ch=8, out_ch=4, bilinear=True, norm='batchnorm')
    in_ch, out_ch, n = 8, 4, 2
    x1 = jax.random.normal(ks[0], (n, in_ch // 2, 8, 8), jnp.float32)    # deep features
    x2 = jax.random.normal(ks[1], (n, in_ch // 2, 16, 16), jnp.float32)  # skip connection

    params = {
        'w1': 0.1 * jax.random.normal(ks[2], (out_ch, in_ch, 3, 3), jnp.float32),
        'b1': 0.1 * jax.random.normal(ks[3], (out_ch,), jnp.float32),
        'g1': 1.0 + 0.1 * jax.random.normal(ks[4], (out_ch,), jnp.float32),
        'be1': 0.1 * jax.random.normal(ks[5], (out_ch,), jnp.float32),
        'w2': 0.1 * jax.random.normal(ks[6], (out_ch, out_ch, 3, 3), jnp.float32),
        'b2': 0.1 * jax.random.normal(ks[7], (out_ch,), jnp.float32),
        'g2': 1.0 + 0.1 * jax.random.normal(ks[8], (out_ch,), jnp.float32),
        'be2': 0.1 * jax.random.normal(ks[9], (out_ch,), jnp.float32),
    }

    out = jax.block_until_ready(jax.jit(up_forward)(x1, x2, params))
    ref = jax.block_until_ready(ref_up_forward(x1, x2, params))

    assert out.shape == (n, out_ch, 16, 16), out.shape
    # MXU operands are bf16 (per perf review), BN/ReLU/stats are exact f32, so
    # agreement with the f32 reference is at bf16 level (~1e-2 worst case).
    err = float(jnp.max(jnp.abs(out - ref)))
    assert err < 5e-2, err
    print("KERNEL_OK")
</pallas_src>

<mosaic_0001>
module attributes {stable_mosaic.version = 11 : i64} {
  func.func private @main(%arg0: i32) attributes {dimension_semantics = [#tpu.dimension_semantics<core_parallel>], iteration_bounds = array<i64: 2>, tpu.core_type = #tpu.core_type<sc_scalar_subcore>, window_params = []} {
    return
  }
}

module attributes {stable_mosaic.version = 11 : i64} {
  func.func private @main(%arg0: i32) attributes {dimension_semantics = [#tpu.dimension_semantics<core_parallel>], iteration_bounds = array<i64: 2>, tpu.core_type = #tpu.core_type<sc_scalar_subcore>, window_params = []} {
    return
  }
}

module attributes {stable_mosaic.version = 11 : i64} {
  func.func @kernel(%arg0: memref<8x256xf32, #tpu.memory_space<vmem>>, %arg1: memref<8x64xf32, #tpu.memory_space<vmem>>, %arg2: memref<64x256xbf16, #tpu.memory_space<vmem>>, %arg3: memref<4x72xbf16, #tpu.memory_space<vmem>>, %arg4: memref<4x36xbf16, #tpu.memory_space<vmem>>, %arg5: memref<4x4xf32, #tpu.memory_space<vmem>>, %arg6: memref<2x640xf32, #tpu.memory_space<vmem>>, %arg7: memref<8x256xf32, #tpu.memory_space<vmem>>, %arg8: memref<8x896xbf16, #tpu.memory_space<vmem>>) attributes {dimension_semantics = [], scalar_prefetch = 0 : i64, scratch_operands = 1 : i64, tpu.core_type = #tpu.core_type<tc>} {
    %cst = arith.constant 0.000000e+00 : bf16
    %0 = vector.broadcast %cst : bf16 to vector<8x128xbf16>
    %c0 = arith.constant 0 : index
    %c0_0 = arith.constant 0 : index
    %1 = vector.load %arg8[%c0, %c0_0] : memref<8x896xbf16, #tpu.memory_space<vmem>>, vector<8x128xbf16>
    tpu.vector_store %arg8[%c0, %c0_0], %0 {strides = array<i32>} : memref<8x896xbf16, #tpu.memory_space<vmem>>, vector<8x128xbf16>,
    %c0_1 = arith.constant 0 : index
    %c384 = arith.constant 384 : index
    %2 = vector.load %arg8[%c0_1, %c384] : memref<8x896xbf16, #tpu.memory_space<vmem>>, vector<8x128xbf16>
    tpu.vector_store %arg8[%c0_1, %c384], %0 {strides = array<i32>} : memref<8x896xbf16, #tpu.memory_space<vmem>>, vector<8x128xbf16>,
    %c0_2 = arith.constant 0 : index
    %c768 = arith.constant 768 : index
    %3 = vector.load %arg8[%c0_2, %c768] : memref<8x896xbf16, #tpu.memory_space<vmem>>, vector<8x128xbf16>
    tpu.vector_store %arg8[%c0_2, %c768], %0 {strides = array<i32>} : memref<8x896xbf16, #tpu.memory_space<vmem>>, vector<8x128xbf16>,
    %c0_3 = arith.constant 0 : index
    %c0_4 = arith.constant 0 : index
    %4 = vector.load %arg6[%c0_3, %c0_4] : memref<2x640xf32, #tpu.memory_space<vmem>>, vector<1x640xf32>
    %c1 = arith.constant 1 : index
    %c0_5 = arith.constant 0 : index
    %5 = vector.load %arg6[%c1, %c0_5] : memref<2x640xf32, #tpu.memory_space<vmem>>, vector<1x640xf32>
    %c0_6 = arith.constant 0 : index
    %c0_7 = arith.constant 0 : index
    %6 = vector.load %arg1[%c0_6, %c0_7] : memref<8x64xf32, #tpu.memory_space<vmem>>, vector<8x64xf32>
    %7 = arith.truncf %6 : vector<8x64xf32> to vector<8x64xbf16>
    %c0_8 = arith.constant 0 : index
    %c0_9 = arith.constant 0 : index
    %8 = vector.load %arg2[%c0_8, %c0_9] : memref<64x256xbf16, #tpu.memory_space<vmem>>, vector<64x256xbf16>
    %cst_10 = arith.constant dense<0.000000e+00> : vector<8x256xf32>
    %9 = tpu.matmul %7, %8, %cst_10 {dimension_numbers = #tpu.dot_dimension_numbers<[1], [0], [0], [1], [0, 0, 1, 1], [], []>} : vector<8x64xbf16>, vector<64x256xbf16>, vector<8x256xf32> -> vector<8x256xf32>
    %c0_11 = arith.constant 0 : index
    %c0_12 = arith.constant 0 : index
    %10 = vector.load %arg0[%c0_11, %c0_12] : memref<8x256xf32, #tpu.memory_space<vmem>>, vector<4x256xf32>
    %11 = arith.truncf %10 : vector<4x256xf32> to vector<4x256xbf16>
    %c0_13 = arith.constant 0 : index
    %c128 = arith.constant 128 : index
    %12 = vector.load %arg8[%c0_13, %c128] : memref<8x896xbf16, #tpu.memory_space<vmem>>, vector<4x256xbf16>
    tpu.vector_store %arg8[%c0_13, %c128], %11 {strides = array<i32>} : memref<8x896xbf16, #tpu.memory_space<vmem>>, vector<4x256xbf16>,
    %13 = vector.extract_strided_slice %9 {offsets = [0, 0], sizes = [4, 256], strides = [1, 1]} : vector<8x256xf32> to vector<4x256xf32>
    %14 = arith.truncf %13 : vector<4x256xf32> to vector<4x256xbf16>
    %c4 = arith.constant 4 : index
    %c128_14 = arith.constant 128 : index
    %15 = vector.load %arg8[%c4, %c128_14] : memref<8x896xbf16, #tpu.memory_space<vmem>>, vector<4x256xbf16>
    tpu.vector_store %arg8[%c4, %c128_14], %14 {strides = array<i32>} : memref<8x896xbf16, #tpu.memory_space<vmem>>, vector<4x256xbf16>,
    %c4_15 = arith.constant 4 : index
    %c0_16 = arith.constant 0 : index
    %16 = vector.load %arg0[%c4_15, %c0_16] : memref<8x256xf32, #tpu.memory_space<vmem>>, vector<4x256xf32>
    %17 = arith.truncf %16 : vector<4x256xf32> to vector<4x256xbf16>
    %c0_17 = arith.constant 0 : index
    %c512 = arith.constant 512 : index
    %18 = vector.load %arg8[%c0_17, %c512] : memref<8x896xbf16, #tpu.memory_space<vmem>>, vector<4x256xbf16>
    tpu.vector_store %arg8[%c0_17, %c512], %17 {strides = array<i32>} : memref<8x896xbf16, #tpu.memory_space<vmem>>, vector<4x256xbf16>,
    %19 = vector.extract_strided_slice %9 {offsets = [4, 0], sizes = [4, 256], strides = [1, 1]} : vector<8x256xf32> to vector<4x256xf32>
    %20 = arith.truncf %19 : vector<4x256xf32> to vector<4x256xbf16>
    %c4_18 = arith.constant 4 : index
    %c512_19 = arith.constant 512 : index
    %21 = vector.load %arg8[%c4_18, %c512_19] : memref<8x896xbf16, #tpu.memory_space<vmem>>, vector<4x256xbf16>
    tpu.vector_store %arg8[%c4_18, %c512_19], %20 {strides = array<i32>} : memref<8x896xbf16, #tpu.memory_space<vmem>>, vector<4x256xbf16>,
    %c0_20 = arith.constant 0 : index
    %c111 = arith.constant 111 : index
    %22 = vector.load %arg8[%c0_20, %c111] : memref<8x896xbf16, #tpu.memory_space<vmem>>, vector<8x640xbf16>
    %c0_21 = arith.constant 0 : index
    %c0_22 = arith.constant 0 : index
    %23 = vector.load %arg3[%c0_21, %c0_22] : memref<4x72xbf16, #tpu.memory_space<vmem>>, vector<4x8xbf16>
    %cst_23 = arith.constant dense<0.000000e+00> : vector<4x640xf32>
    %24 = tpu.matmul %23, %22, %cst_23 {dimension_numbers = #tpu.dot_dimension_numbers<[1], [0], [0], [1], [0, 0, 1, 1], [], []>} : vector<4x8xbf16>, vector<8x640xbf16>, vector<4x640xf32> -> vector<4x640xf32>
    %c0_24 = arith.constant 0 : index
    %c127 = arith.constant 127 : index
    %25 = vector.load %arg8[%c0_24, %c127] : memref<8x896xbf16, #tpu.memory_space<vmem>>, vector<8x640xbf16>
    %c0_25 = arith.constant 0 : index
    %c24 = arith.constant 24 : index
    %26 = vector.load %arg3[%c0_25, %c24] : memref<4x72xbf16, #tpu.memory_space<vmem>>, vector<4x8xbf16>
    %cst_26 = arith.constant dense<0.000000e+00> : vector<4x640xf32>
    %27 = tpu.matmul %26, %25, %cst_26 {dimension_numbers = #tpu.dot_dimension_numbers<[1], [0], [0], [1], [0, 0, 1, 1], [], []>} : vector<4x8xbf16>, vector<8x640xbf16>, vector<4x640xf32> -> vector<4x640xf32>
    %28 = arith.addf %24, %27 : vector<4x640xf32>
    %c0_27 = arith.constant 0 : index
    %c143 = arith.constant 143 : index
    %29 = vector.load %arg8[%c0_27, %c143] : memref<8x896xbf16, #tpu.memory_space<vmem>>, vector<8x640xbf16>
    %c0_28 = arith.constant 0 : index
    %c48 = arith.constant 48 : index
    %30 = vector.load %arg3[%c0_28, %c48] : memref<4x72xbf16, #tpu.memory_space<vmem>>, vector<4x8xbf16>
    %cst_29 = arith.constant dense<0.000000e+00> : vector<4x640xf32>
    %31 = tpu.matmul %30, %29, %cst_29 {dimension_numbers = #tpu.dot_dimension_numbers<[1], [0], [0], [1], [0, 0, 1, 1], [], []>} : vector<4x8xbf16>, vector<8x640xbf16>, vector<4x640xf32> -> vector<4x640xf32>
    %32 = arith.addf %28, %31 : vector<4x640xf32>
    %c0_30 = arith.constant 0 : index
    %c112 = arith.constant 112 : index
    %33 = vector.load %arg8[%c0_30, %c112] : memref<8x896xbf16, #tpu.memory_space<vmem>>, vector<8x640xbf16>
    %c0_31 = arith.constant 0 : index
    %c8 = arith.constant 8 : index
    %34 = vector.load %arg3[%c0_31, %c8] : memref<4x72xbf16, #tpu.memory_space<vmem>>, vector<4x8xbf16>
    %cst_32 = arith.constant dense<0.000000e+00> : vector<4x640xf32>
    %35 = tpu.matmul %34, %33, %cst_32 {dimension_numbers = #tpu.dot_dimension_numbers<[1], [0], [0], [1], [0, 0, 1, 1], [], []>} : vector<4x8xbf16>, vector<8x640xbf16>, vector<4x640xf32> -> vector<4x640xf32>
    %c0_33 = arith.constant 0 : index
    %c128_34 = arith.constant 128 : index
    %36 = vector.load %arg8[%c0_33, %c128_34] : memref<8x896xbf16, #tpu.memory_space<vmem>>, vector<8x640xbf16>
    %c0_35 = arith.constant 0 : index
    %c32 = arith.constant 32 : index
    %37 = vector.load %arg3[%c0_35, %c32] : memref<4x72xbf16, #tpu.memory_space<vmem>>, vector<4x8xbf16>
    %cst_36 = arith.constant dense<0.000000e+00> : vector<4x640xf32>
    %38 = tpu.matmul %37, %36, %cst_36 {dimension_numbers = #tpu.dot_dimension_numbers<[1], [0], [0], [1], [0, 0, 1, 1], [], []>} : vector<4x8xbf16>, vector<8x640xbf16>, vector<4x640xf32> -> vector<4x640xf32>
    %39 = arith.addf %35, %38 : vector<4x640xf32>
    %c0_37 = arith.constant 0 : index
    %c144 = arith.constant 144 : index
    %40 = vector.load %arg8[%c0_37, %c144] : memref<8x896xbf16, #tpu.memory_space<vmem>>, vector<8x640xbf16>
    %c0_38 = arith.constant 0 : index
    %c56 = arith.constant 56 : index
    %41 = vector.load %arg3[%c0_38, %c56] : memref<4x72xbf16, #tpu.memory_space<vmem>>, vector<4x8xbf16>
    %cst_39 = arith.constant dense<0.000000e+00> : vector<4x640xf32>
    %42 = tpu.matmul %41, %40, %cst_39 {dimension_numbers = #tpu.dot_dimension_numbers<[1], [0], [0], [1], [0, 0, 1, 1], [], []>} : vector<4x8xbf16>, vector<8x640xbf16>, vector<4x640xf32> -> vector<4x640xf32>
    %43 = arith.addf %39, %42 : vector<4x640xf32>
    %c0_40 = arith.constant 0 : index
    %c113 = arith.constant 113 : index
    %44 = vector.load %arg8[%c0_40, %c113] : memref<8x896xbf16, #tpu.memory_space<vmem>>, vector<8x640xbf16>
    %c0_41 = arith.constant 0 : index
    %c16 = arith.constant 16 : index
    %45 = vector.load %arg3[%c0_41, %c16] : memref<4x72xbf16, #tpu.memory_space<vmem>>, vector<4x8xbf16>
    %cst_42 = arith.constant dense<0.000000e+00> : vector<4x640xf32>
    %46 = tpu.matmul %45, %44, %cst_42 {dimension_numbers = #tpu.dot_dimension_numbers<[1], [0], [0], [1], [0, 0, 1, 1], [], []>} : vector<4x8xbf16>, vector<8x640xbf16>, vector<4x640xf32> -> vector<4x640xf32>
    %c0_43 = arith.constant 0 : index
    %c129 = arith.constant 129 : index
    %47 = vector.load %arg8[%c0_43, %c129] : memref<8x896xbf16, #tpu.memory_space<vmem>>, vector<8x640xbf16>
    %c0_44 = arith.constant 0 : index
    %c40 = arith.constant 40 : index
    %48 = vector.load %arg3[%c0_44, %c40] : memref<4x72xbf16, #tpu.memory_space<vmem>>, vector<4x8xbf16>
    %cst_45 = arith.constant dense<0.000000e+00> : vector<4x640xf32>
    %49 = tpu.matmul %48, %47, %cst_45 {dimension_numbers = #tpu.dot_dimension_numbers<[1], [0], [0], [1], [0, 0, 1, 1], [], []>} : vector<4x8xbf16>, vector<8x640xbf16>, vector<4x640xf32> -> vector<4x640xf32>
    %50 = arith.addf %46, %49 : vector<4x640xf32>
    %c0_46 = arith.constant 0 : index
    %c145 = arith.constant 145 : index
    %51 = vector.load %arg8[%c0_46, %c145] : memref<8x896xbf16, #tpu.memory_space<vmem>>, vector<8x640xbf16>
    %c0_47 = arith.constant 0 : index
    %c64 = arith.constant 64 : index
    %52 = vector.load %arg3[%c0_47, %c64] : memref<4x72xbf16, #tpu.memory_space<vmem>>, vector<4x8xbf16>
    %cst_48 = arith.constant dense<0.000000e+00> : vector<4x640xf32>
    %53 = tpu.matmul %52, %51, %cst_48 {dimension_numbers = #tpu.dot_dimension_numbers<[1], [0], [0], [1], [0, 0, 1, 1], [], []>} : vector<4x8xbf16>, vector<8x640xbf16>, vector<4x640xf32> -> vector<4x640xf32>
    %54 = arith.addf %50, %53 : vector<4x640xf32>
    %55 = vector.broadcast %4 : vector<1x640xf32> to vector<4x640xf32>
    %56 = arith.mulf %55, %32 : vector<4x640xf32>
    %57 = arith.addf %43, %56 : vector<4x640xf32>
    %58 = vector.broadcast %5 : vector<1x640xf32> to vector<4x640xf32>
    %59 = arith.mulf %58, %54 : vector<4x640xf32>
    %60 = arith.addf %57, %59 : vector<4x640xf32>
    %c0_49 = arith.constant 0 : index
    %c0_50 = arith.constant 0 : index
    %61 = vector.load %arg5[%c0_49, %c0_50] : memref<4x4xf32, #tpu.memory_space<vmem>>, vector<4x1xf32>
    %c0_51 = arith.constant 0 : index
    %c1_52 = arith.constant 1 : index
    %62 = vector.load %arg5[%c0_51, %c1_52] : memref<4x4xf32, #tpu.memory_space<vmem>>, vector<4x1xf32>
    %cst_53 = arith.constant 0.000000e+00 : f32
    %63 = vector.broadcast %cst_53 : f32 to vector<4x1xf32>
    %cst_54 = arith.constant 0.000000e+00 : f32
    %64 = vector.broadcast %cst_54 : f32 to vector<4x1xf32>
    %65 = vector.extract_strided_slice %60 {offsets = [0, 0], sizes = [4, 256], strides = [1, 1]} : vector<4x640xf32> to vector<4x256xf32>
    %cst_55 = arith.constant dense<0.000000e+00> : vector<4xf32>
    %66 = vector.multi_reduction <add>, %65, %cst_55 [1] : vector<4x256xf32> to vector<4xf32>
    %67 = vector.shape_cast %66 : vector<4xf32> to vector<4x1xf32>
    %68 = arith.addf %63, %67 : vector<4x1xf32>
    %69 = arith.mulf %65, %65 : vector<4x256xf32>
    %cst_56 = arith.constant dense<0.000000e+00> : vector<4xf32>
    %70 = vector.multi_reduction <add>, %69, %cst_56 [1] : vector<4x256xf32> to vector<4xf32>
    %71 = vector.shape_cast %70 : vector<4xf32> to vector<4x1xf32>
    %72 = arith.addf %64, %71 : vector<4x1xf32>
    %73 = vector.extract_strided_slice %60 {offsets = [0, 384], sizes = [4, 256], strides = [1, 1]} : vector<4x640xf32> to vector<4x256xf32>
    %cst_57 = arith.constant dense<0.000000e+00> : vector<4xf32>
    %74 = vector.multi_reduction <add>, %73, %cst_57 [1] : vector<4x256xf32> to vector<4xf32>
    %75 = vector.shape_cast %74 : vector<4xf32> to vector<4x1xf32>
    %76 = arith.addf %68, %75 : vector<4x1xf32>
    %77 = arith.mulf %73, %73 : vector<4x256xf32>
    %cst_58 = arith.constant dense<0.000000e+00> : vector<4xf32>
    %78 = vector.multi_reduction <add>, %77, %cst_58 [1] : vector<4x256xf32> to vector<4xf32>
    %79 = vector.shape_cast %78 : vector<4xf32> to vector<4x1xf32>
    %80 = arith.addf %72, %79 : vector<4x1xf32>
    %cst_59 = arith.constant 0.001953125 : f32
    %81 = vector.broadcast %cst_59 : f32 to vector<4x1xf32>
    %82 = arith.mulf %76, %81 : vector<4x1xf32>
    %cst_60 = arith.constant 0.001953125 : f32
    %83 = vector.broadcast %cst_60 : f32 to vector<4x1xf32>
    %84 = arith.mulf %80, %83 : vector<4x1xf32>
    %85 = arith.mulf %82, %82 : vector<4x1xf32>
    %86 = arith.subf %84, %85 : vector<4x1xf32>
    %cst_61 = arith.constant 9.99999974E-6 : f32
    %87 = vector.broadcast %cst_61 : f32 to vector<4x1xf32>
    %88 = arith.addf %86, %87 : vector<4x1xf32>
    %89 = math.rsqrt %88 : vector<4x1xf32>
    %90 = arith.mulf %61, %89 : vector<4x1xf32>
    %91 = arith.mulf %82, %90 : vector<4x1xf32>
    %92 = arith.subf %62, %91 : vector<4x1xf32>
    %93 = vector.broadcast %90 : vector<4x1xf32> to vector<4x640xf32>
    %94 = arith.mulf %60, %93 : vector<4x640xf32>
    %95 = vector.broadcast %92 : vector<4x1xf32> to vector<4x640xf32>
    %96 = arith.addf %94, %95 : vector<4x640xf32>
    %cst_62 = arith.constant 0.000000e+00 : f32
    %97 = vector.broadcast %cst_62 : f32 to vector<4x640xf32>
    %98 = arith.maximumf %96, %97 : vector<4x640xf32>
    %99 = vector.extract_strided_slice %98 {offsets = [0, 0], sizes = [4, 256], strides = [1, 1]} : vector<4x640xf32> to vector<4x256xf32>
    %100 = arith.truncf %99 : vector<4x256xf32> to vector<4x256xbf16>
    %c0_63 = arith.constant 0 : index
    %c128_64 = arith.constant 128 : index
    %101 = vector.load %arg8[%c0_63, %c128_64] : memref<8x896xbf16, #tpu.memory_space<vmem>>, vector<4x256xbf16>
    tpu.vector_store %arg8[%c0_63, %c128_64], %100 {strides = array<i32>} : memref<8x896xbf16, #tpu.memory_space<vmem>>, vector<4x256xbf16>,
    %102 = vector.extract_strided_slice %98 {offsets = [0, 384], sizes = [4, 256], strides = [1, 1]} : vector<4x640xf32> to vector<4x256xf32>
    %103 = arith.truncf %102 : vector<4x256xf32> to vector<4x256xbf16>
    %c0_65 = arith.constant 0 : index
    %c512_66 = arith.constant 512 : index
    %104 = vector.load %arg8[%c0_65, %c512_66] : memref<8x896xbf16, #tpu.memory_space<vmem>>, vector<4x256xbf16>
    tpu.vector_store %arg8[%c0_65, %c512_66], %103 {strides = array<i32>} : memref<8x896xbf16, #tpu.memory_space<vmem>>, vector<4x256xbf16>,
    %c0_67 = arith.constant 0 : index
    %c111_68 = arith.constant 111 : index
    %105 = vector.load %arg8[%c0_67, %c111_68] : memref<8x896xbf16, #tpu.memory_space<vmem>>, vector<4x640xbf16>
    %c0_69 = arith.constant 0 : index
    %c0_70 = arith.constant 0 : index
    %106 = vector.load %arg4[%c0_69, %c0_70] : memref<4x36xbf16, #tpu.memory_space<vmem>>, vector<4x4xbf16>
    %cst_71 = arith.constant dense<0.000000e+00> : vector<4x640xf32>
    %107 = tpu.matmul %106, %105, %cst_71 {dimension_numbers = #tpu.dot_dimension_numbers<[1], [0], [0], [1], [0, 0, 1, 1], [], []>} : vector<4x4xbf16>, vector<4x640xbf16>, vector<4x640xf32> -> vector<4x640xf32>
    %c0_72 = arith.constant 0 : index
    %c127_73 = arith.constant 127 : index
    %108 = vector.load %arg8[%c0_72, %c127_73] : memref<8x896xbf16, #tpu.memory_space<vmem>>, vector<4x640xbf16>
    %c0_74 = arith.constant 0 : index
    %c12 = arith.constant 12 : index
    %109 = vector.load %arg4[%c0_74, %c12] : memref<4x36xbf16, #tpu.memory_space<vmem>>, vector<4x4xbf16>
    %cst_75 = arith.constant dense<0.000000e+00> : vector<4x640xf32>
    %110 = tpu.matmul %109, %108, %cst_75 {dimension_numbers = #tpu.dot_dimension_numbers<[1], [0], [0], [1], [0, 0, 1, 1], [], []>} : vector<4x4xbf16>, vector<4x640xbf16>, vector<4x640xf32> -> vector<4x640xf32>
    %111 = arith.addf %107, %110 : vector<4x640xf32>
    %c0_76 = arith.constant 0 : index
    %c143_77 = arith.constant 143 : index
    %112 = vector.load %arg8[%c0_76, %c143_77] : memref<8x896xbf16, #tpu.memory_space<vmem>>, vector<4x640xbf16>
    %c0_78 = arith.constant 0 : index
    %c24_79 = arith.constant 24 : index
    %113 = vector.load %arg4[%c0_78, %c24_79] : memref<4x36xbf16, #tpu.memory_space<vmem>>, vector<4x4xbf16>
    %cst_80 = arith.constant dense<0.000000e+00> : vector<4x640xf32>
    %114 = tpu.matmul %113, %112, %cst_80 {dimension_numbers = #tpu.dot_dimension_numbers<[1], [0], [0], [1], [0, 0, 1, 1], [], []>} : vector<4x4xbf16>, vector<4x640xbf16>, vector<4x640xf32> -> vector<4x640xf32>
    %115 = arith.addf %111, %114 : vector<4x640xf32>
    %c0_81 = arith.constant 0 : index
    %c112_82 = arith.constant 112 : index
    %116 = vector.load %arg8[%c0_81, %c112_82] : memref<8x896xbf16, #tpu.memory_space<vmem>>, vector<4x640xbf16>
    %c0_83 = arith.constant 0 : index
    %c4_84 = arith.constant 4 : index
    %117 = vector.load %arg4[%c0_83, %c4_84] : memref<4x36xbf16, #tpu.memory_space<vmem>>, vector<4x4xbf16>
    %cst_85 = arith.constant dense<0.000000e+00> : vector<4x640xf32>
    %118 = tpu.matmul %117, %116, %cst_85 {dimension_numbers = #tpu.dot_dimension_numbers<[1], [0], [0], [1], [0, 0, 1, 1], [], []>} : vector<4x4xbf16>, vector<4x640xbf16>, vector<4x640xf32> -> vector<4x640xf32>
    %c0_86 = arith.constant 0 : index
    %c128_87 = arith.constant 128 : index
    %119 = vector.load %arg8[%c0_86, %c128_87] : memref<8x896xbf16, #tpu.memory_space<vmem>>, vector<4x640xbf16>
    %c0_88 = arith.constant 0 : index
    %c16_89 = arith.constant 16 : index
    %120 = vector.load %arg4[%c0_88, %c16_89] : memref<4x36xbf16, #tpu.memory_space<vmem>>, vector<4x4xbf16>
    %cst_90 = arith.constant dense<0.000000e+00> : vector<4x640xf32>
    %121 = tpu.matmul %120, %119, %cst_90 {dimension_numbers = #tpu.dot_dimension_numbers<[1], [0], [0], [1], [0, 0, 1, 1], [], []>} : vector<4x4xbf16>, vector<4x640xbf16>, vector<4x640xf32> -> vector<4x640xf32>
    %122 = arith.addf %118, %121 : vector<4x640xf32>
    %c0_91 = arith.constant 0 : index
    %c144_92 = arith.constant 144 : index
    %123 = vector.load %arg8[%c0_91, %c144_92] : memref<8x896xbf16, #tpu.memory_space<vmem>>, vector<4x640xbf16>
    %c0_93 = arith.constant 0 : index
    %c28 = arith.constant 28 : index
    %124 = vector.load %arg4[%c0_93, %c28] : memref<4x36xbf16, #tpu.memory_space<vmem>>, vector<4x4xbf16>
    %cst_94 = arith.constant dense<0.000000e+00> : vector<4x640xf32>
    %125 = tpu.matmul %124, %123, %cst_94 {dimension_numbers = #tpu.dot_dimension_numbers<[1], [0], [0], [1], [0, 0, 1, 1], [], []>} : vector<4x4xbf16>, vector<4x640xbf16>, vector<4x640xf32> -> vector<4x640xf32>
    %126 = arith.addf %122, %125 : vector<4x640xf32>
    %c0_95 = arith.constant 0 : index
    %c113_96 = arith.constant 113 : index
    %127 = vector.load %arg8[%c0_95, %c113_96] : memref<8x896xbf16, #tpu.memory_space<vmem>>, vector<4x640xbf16>
    %c0_97 = arith.constant 0 : index
    %c8_98 = arith.constant 8 : index
    %128 = vector.load %arg4[%c0_97, %c8_98] : memref<4x36xbf16, #tpu.memory_space<vmem>>, vector<4x4xbf16>
    %cst_99 = arith.constant dense<0.000000e+00> : vector<4x640xf32>
    %129 = tpu.matmul %128, %127, %cst_99 {dimension_numbers = #tpu.dot_dimension_numbers<[1], [0], [0], [1], [0, 0, 1, 1], [], []>} : vector<4x4xbf16>, vector<4x640xbf16>, vector<4x640xf32> -> vector<4x640xf32>
    %c0_100 = arith.constant 0 : index
    %c129_101 = arith.constant 129 : index
    %130 = vector.load %arg8[%c0_100, %c129_101] : memref<8x896xbf16, #tpu.memory_space<vmem>>, vector<4x640xbf16>
    %c0_102 = arith.constant 0 : index
    %c20 = arith.constant 20 : index
    %131 = vector.load %arg4[%c0_102, %c20] : memref<4x36xbf16, #tpu.memory_space<vmem>>, vector<4x4xbf16>
    %cst_103 = arith.constant dense<0.000000e+00> : vector<4x640xf32>
    %132 = tpu.matmul %131, %130, %cst_103 {dimension_numbers = #tpu.dot_dimension_numbers<[1], [0], [0], [1], [0, 0, 1, 1], [], []>} : vector<4x4xbf16>, vector<4x640xbf16>, vector<4x640xf32> -> vector<4x640xf32>
    %133 = arith.addf %129, %132 : vector<4x640xf32>
    %c0_104 = arith.constant 0 : index
    %c145_105 = arith.constant 145 : index
    %134 = vector.load %arg8[%c0_104, %c145_105] : memref<8x896xbf16, #tpu.memory_space<vmem>>, vector<4x640xbf16>
    %c0_106 = arith.constant 0 : index
    %c32_107 = arith.constant 32 : index
    %135 = vector.load %arg4[%c0_106, %c32_107] : memref<4x36xbf16, #tpu.memory_space<vmem>>, vector<4x4xbf16>
    %cst_108 = arith.constant dense<0.000000e+00> : vector<4x640xf32>
    %136 = tpu.matmul %135, %134, %cst_108 {dimension_numbers = #tpu.dot_dimension_numbers<[1], [0], [0], [1], [0, 0, 1, 1], [], []>} : vector<4x4xbf16>, vector<4x640xbf16>, vector<4x640xf32> -> vector<4x640xf32>
    %137 = arith.addf %133, %136 : vector<4x640xf32>
    %138 = vector.broadcast %4 : vector<1x640xf32> to vector<4x640xf32>
    %139 = arith.mulf %138, %115 : vector<4x640xf32>
    %140 = arith.addf %126, %139 : vector<4x640xf32>
    %141 = vector.broadcast %5 : vector<1x640xf32> to vector<4x640xf32>
    %142 = arith.mulf %141, %137 : vector<4x640xf32>
    %143 = arith.addf %140, %142 : vector<4x640xf32>
    %c0_109 = arith.constant 0 : index
    %c2 = arith.constant 2 : index
    %144 = vector.load %arg5[%c0_109, %c2] : memref<4x4xf32, #tpu.memory_space<vmem>>, vector<4x1xf32>
    %c0_110 = arith.constant 0 : index
    %c3 = arith.constant 3 : index
    %145 = vector.load %arg5[%c0_110, %c3] : memref<4x4xf32, #tpu.memory_space<vmem>>, vector<4x1xf32>
    %cst_111 = arith.constant 0.000000e+00 : f32
    %146 = vector.broadcast %cst_111 : f32 to vector<4x1xf32>
    %cst_112 = arith.constant 0.000000e+00 : f32
    %147 = vector.broadcast %cst_112 : f32 to vector<4x1xf32>
    %148 = vector.extract_strided_slice %143 {offsets = [0, 0], sizes = [4, 256], strides = [1, 1]} : vector<4x640xf32> to vector<4x256xf32>
    %cst_113 = arith.constant dense<0.000000e+00> : vector<4xf32>
    %149 = vector.multi_reduction <add>, %148, %cst_113 [1] : vector<4x256xf32> to vector<4xf32>
    %150 = vector.shape_cast %149 : vector<4xf32> to vector<4x1xf32>
    %151 = arith.addf %146, %150 : vector<4x1xf32>
    %152 = arith.mulf %148, %148 : vector<4x256xf32>
    %cst_114 = arith.constant dense<0.000000e+00> : vector<4xf32>
    %153 = vector.multi_reduction <add>, %152, %cst_114 [1] : vector<4x256xf32> to vector<4xf32>
    %154 = vector.shape_cast %153 : vector<4xf32> to vector<4x1xf32>
    %155 = arith.addf %147, %154 : vector<4x1xf32>
    %156 = vector.extract_strided_slice %143 {offsets = [0, 384], sizes = [4, 256], strides = [1, 1]} : vector<4x640xf32> to vector<4x256xf32>
    %cst_115 = arith.constant dense<0.000000e+00> : vector<4xf32>
    %157 = vector.multi_reduction <add>, %156, %cst_115 [1] : vector<4x256xf32> to vector<4xf32>
    %158 = vector.shape_cast %157 : vector<4xf32> to vector<4x1xf32>
    %159 = arith.addf %151, %158 : vector<4x1xf32>
    %160 = arith.mulf %156, %156 : vector<4x256xf32>
    %cst_116 = arith.constant dense<0.000000e+00> : vector<4xf32>
    %161 = vector.multi_reduction <add>, %160, %cst_116 [1] : vector<4x256xf32> to vector<4xf32>
    %162 = vector.shape_cast %161 : vector<4xf32> to vector<4x1xf32>
    %163 = arith.addf %155, %162 : vector<4x1xf32>
    %cst_117 = arith.constant 0.001953125 : f32
    %164 = vector.broadcast %cst_117 : f32 to vector<4x1xf32>
    %165 = arith.mulf %159, %164 : vector<4x1xf32>
    %cst_118 = arith.constant 0.001953125 : f32
    %166 = vector.broadcast %cst_118 : f32 to vector<4x1xf32>
    %167 = arith.mulf %163, %166 : vector<4x1xf32>
    %168 = arith.mulf %165, %165 : vector<4x1xf32>
    %169 = arith.subf %167, %168 : vector<4x1xf32>
    %cst_119 = arith.constant 9.99999974E-6 : f32
    %170 = vector.broadcast %cst_119 : f32 to vector<4x1xf32>
    %171 = arith.addf %169, %170 : vector<4x1xf32>
    %172 = math.rsqrt %171 : vector<4x1xf32>
    %173 = arith.mulf %144, %172 : vector<4x1xf32>
    %174 = arith.mulf %165, %173 : vector<4x1xf32>
    %175 = arith.subf %145, %174 : vector<4x1xf32>
    %176 = vector.broadcast %173 : vector<4x1xf32> to vector<4x640xf32>
    %177 = arith.mulf %143, %176 : vector<4x640xf32>
    %178 = vector.broadcast %175 : vector<4x1xf32> to vector<4x640xf32>
    %179 = arith.addf %177, %178 : vector<4x640xf32>
    %cst_120 = arith.constant 0.000000e+00 : f32
    %180 = vector.broadcast %cst_120 : f32 to vector<4x640xf32>
    %181 = arith.maximumf %179, %180 : vector<4x640xf32>
    %182 = vector.extract_strided_slice %181 {offsets = [0, 0], sizes = [4, 256], strides = [1, 1]} : vector<4x640xf32> to vector<4x256xf32>
    %c0_121 = arith.constant 0 : index
    %c0_122 = arith.constant 0 : index
    %183 = vector.load %arg7[%c0_121, %c0_122] : memref<8x256xf32, #tpu.memory_space<vmem>>, vector<4x256xf32>
    tpu.vector_store %arg7[%c0_121, %c0_122], %182 {strides = array<i32>} : memref<8x256xf32, #tpu.memory_space<vmem>>, vector<4x256xf32>,
    %184 = vector.extract_strided_slice %181 {offsets = [0, 384], sizes = [4, 256], strides = [1, 1]} : vector<4x640xf32> to vector<4x256xf32>
    %c4_123 = arith.constant 4 : index
    %c0_124 = arith.constant 0 : index
    %185 = vector.load %arg7[%c4_123, %c0_124] : memref<8x256xf32, #tpu.memory_space<vmem>>, vector<4x256xf32>
    tpu.vector_store %arg7[%c4_123, %c0_124], %184 {strides = array<i32>} : memref<8x256xf32, #tpu.memory_space<vmem>>, vector<4x256xf32>,
    return
  }
}

</mosaic_0001>

<bundles_post_ra>
// kernel: up_forward.1
= control target key start
LH: loop header
LB: loop body
LE: loop exit
PB: predicated region body
PF: predicated region fallthrough
CT: control target
= control target key end

     0   :  { %v4194_v1 = vmov 0   ;;  %vm83_vm0 = vcmask 523264   ;;  %v4195_v24 = vmov 1983009808   ;;  %v172_v26 = vlaneseq  ;;  %s4196_s26 = smov 1   ;;  %s4197_s27 = smov 104   ;;  %s4959_s2 = inlined_call_operand.vmem [shape: bf16[64,256], index: 2, kind: input, shape index: {}]   ;;  %s4960_s1 = inlined_call_operand.vmem [shape: f32[8,64], index: 1, kind: input, shape index: {}]   ;;  %s4961_s0 = inlined_call_operand.vmem [shape: f32[8,256], index: 0, kind: input, shape index: {}]   ;;  %s4962_s3 = inlined_call_operand.vmem [shape: bf16[4,72], index: 3, kind: input, shape index: {}]   ;;  %s4963_s6 = inlined_call_operand.vmem [shape: f32[2,640], index: 6, kind: input, shape index: {}]   ;;  %s4964_s5 = inlined_call_operand.vmem [shape: f32[4,4], index: 5, kind: input, shape index: {}]   ;;  %s4965_s4 = inlined_call_operand.vmem [shape: bf16[4,36], index: 4, kind: input, shape index: {}]   ;;  %s4966_s7 = inlined_call_operand.vmem [shape: f32[8,256], index: 7, kind: output, shape index: {}]  }
   0x1   :  { %v4118_v0 = vld [vmem:[%s4959_s2 + $0x4] ss:$8 sps:$4 sm:$0xff]   ;;  %119 = vmatprep.mubr.bf16.mxu0 %v4194_v1  ;;  %27 = vst [vmem:[#allocation2] sm:$0xf] %v4194_v1  ;;  %28 = vst [vmem:[#allocation2 + $0xc] sm:$0xf] %v4194_v1  ;;  %263 = vmatprep.mubr.bf16.mxu1 %v4194_v1  ;;  %v170_v25 = vunpack.c.l.s4 %v4195_v24 }
   0x2   :  { %29 = vst [vmem:[#allocation2 + $0x18] sm:$0xf] %v4194_v1  ;;  %v4120_v2 = vld [vmem:[%s4959_s2] ss:$8 sps:$4 sm:$0xff]   ;;  %4113 = vset.pattern.permute.xlu0 %v4194_v1  ;;  %87 = vmatprep.subr.bf16.mxu0 %v4118_v0  ;;  %v4121_v3 = vld [vmem:[%s4959_s2 + $0x14] ss:$8 sps:$4 sm:$0xff]  }
   0x3   :  { %88 = vmatpush1.bf16.msra.mxu0 %v4120_v2  ;;  %v4123_v4 = vld [vmem:[%s4959_s2 + $0x10] ss:$8 sps:$4 sm:$0xff]   ;;  %v4124_v5 = vld [vmem:[%s4959_s2 + $0x24] ss:$8 sps:$4 sm:$0xff]   ;;  %v4126_v6 = vld [vmem:[%s4959_s2 + $0x20] ss:$8 sps:$4 sm:$0xff]   ;;  %v171_v27 = vunpack.c.0.s8 %v170_v25 }
   0x4   :  { %89 = vmatprep.subr.bf16.mxu0 %v4121_v3  ;;  %v4127_v7 = vld [vmem:[%s4959_s2 + $0x34] ss:$8 sps:$4 sm:$0xff]   ;;  %v4129_v8 = vld [vmem:[%s4959_s2 + $0x30] ss:$8 sps:$4 sm:$0xff]   ;;  %v33_v9 = vld [vmem:[%s4960_s1] sm:$0xff]  ;;  %v4306_v28 = vshrl.u32 %v172_v26, 7 }
   0x5   :  { %v34_v10 = vpack.c.bf16 %v33_v9, %v33_v9  ;;  %v149_v11 = vld [vmem:[%s4961_s0] sm:$0xf0]  ;;  %v150_v12 = vld [vmem:[%s4961_s0 + $0x8] sm:$0xf0]  ;;  %v128_v15 = vld [vmem:[%s4961_s0] sm:$0xf] }
   0x6   :  { %v3844_v13 = vpack.c.bf16 %v150_v12, %v149_v11  ;;  %v129_v16 = vld [vmem:[%s4961_s0 + $0x8] sm:$0xf]  ;;  %vm215_vm1 = vcmask 1043456   ;;  %v4313_v32 = vsub.s32 %v171_v27, %v4306_v28  ;;  %v4318_v35 = vld [vmem:[%s4962_s3] sm:$0x3]  ;;  %v4198_v42 = vmov 0.0  }
   0x7   :  { %90 = vmatpush1.bf16.msra.mxu0 %v4123_v4  ;;  %v3842_v17 = vpack.c.bf16 %v129_v16, %v128_v15  ;;  %s4199_s28 = smov 17   ;;  %s4200_s29 = smov 113   ;;  %v3674_v47 = vld.sshfl [vmem:[%s4962_s3] sm:$0x3 pattern:$0x76325410] }
   0x8   :  { %91 = vmatprep.subr.bf16.mxu0 %v4124_v5  ;;  %v3645_v14 = vrot.slane %v3844_v13, 10  ;;  %v175_v39 = vrot.slane %v4318_v35, %v4313_v32  ;;  %s4201_s9 = smov 96   ;;  %s4202_s10 = smov 80   ;;  %vm205_vm2 = vcmask 7168   ;;  %vm211_vm3 = vcmask 64512  }
   0x9   :  { %138 = vst [vmem:[#allocation2 + $0x4] sm:$0x33] %v3842_v17  ;;  %s4203_s3 = smov 16   ;;  %s4204_s11 = smov 120   ;;  %vm364_vm4 = vcmask 138240   ;;  %vm4212_vm5 = vmmov 0  }
   0xa   :  { %161 = vst [vmem:[#allocation2 + $0x10] sm:$0x33] %v3645_v14  ;;  %s4205_s12 = smov 112   ;;  %s4206_s13 = smov 72   ;;  %vm550_vm6 = vcmask 924672   ;;  %vm897_vm7 = vcmask 130048  }
   0xb   :  { %92 = vmatpush1.bf16.msra.mxu0 %v4126_v6  ;;  %s4207_s14 = smov 127   ;;  %s4208_s15 = smov 88   ;;  %vm1083_vm8 = vcmask 916480   ;;  %vm1276_vm9 = vcmask 1039360   ;;  %vm1450_vm10 = vcmask 121856   ;;  %vm1636_vm11 = vcmask 908288  }
   0xc   :  { %93 = vmatprep.subr.bf16.mxu0 %v4127_v7  ;;  %s4209_s16 = smov 15   ;;  %s4210_s17 = smov 111   ;;  %vm1975_vm12 = vcmask 1041408   ;;  %vm1971_vm13 = vcmask 31744  }
   0xd   :  { %s4211_s18 = smov 64   ;;  %s4214_s24 = smov 116  }
   0xe   :  { %s4215_s30 = smov 124  }
   0xf   :  { %94 = vmatpush1.bf16.msra.mxu0 %v4129_v8 }
  0x11   :  { %v4142_v14 = vld [vmem:[#allocation2 + $0x14] ss:$0 sps:$4 sm:$0xff]  }
  0x12   :  { %3641 = vmatmul.mubr.msk.bf16.vlgmr.msra.gmra.mrb[0].mxu0 %vm83_vm0, %v34_v10 }
  0x13   :  { %820 = vmatprep.mubr.bf16.mxu0 %v4194_v1 }
  0xe5   :  { %v121_v18 = vpop.f32.mrb[0].mxu0 }
  0xe6   :  { %v123_v19 = vpop.f32.mrb[1].mxu0 }
  0xe7   :  { %v3843_v20 = vpack.c.bf16 %v123_v19, %v121_v18  ;;  %v125_v21 = vpop.f32.mrb[2].mxu0  ;;  %v745_v19 = vsel %vm215_vm1, %v4142_v14, 0 }
  0xe8   :  { %v126_v22 = vpop.f32.mrb[3].mxu0 }
  0xe9   :  { %v146_v23 = vrot.slane %v3843_v20, 6  ;;  %163 = vst [vmem:[#allocation2 + $0x10] sm:$0xcc] %v3843_v20 }
  0xeb   :  { %148 = vst [vmem:[#allocation2 + $0x4] sm:$0xcc] %v146_v23 }
  0xf0   :  { %v704_v29 = vld [vmem:[#allocation2 + $0xc] sm:$0xff]  ;;  %v511_v50 = vld [vmem:[#allocation2 + $0x14] sm:$0xff] }
  0xf1   :  { %v4308_v30 = vcombine.high %v704_v29, %v704_v29  ;;  %v4310_v31 = vcombine.low %v704_v29, %v704_v29  ;;  %v166_v41 = vld [vmem:[#allocation2 + $0x10] sm:$0xff]  ;;  %v3667_v51 = vcombine.low %v511_v50, %v511_v50  ;;  %v3668_v52 = vcombine.high %v511_v50, %v511_v50 }
  0xf2   :  { %v165_v33 = vld [vmem:[#allocation2 + $0x8] sm:$0xff]  ;;  %v164_v34 = vld [vmem:[#allocation2] sm:$0xff]  ;;  %v4340_v43 = vcombine.low %v166_v41, %v166_v41  ;;  %v3651_v45 = vcombine.high %v166_v41, %v166_v41 }
  0xf3   :  { %3682 = vmatprep.subr.msk.bf16.mxu0 %vm215_vm1, %v4308_v30  ;;  %v739_v36 = vsel %vm215_vm1, %v4310_v31, 0  ;;  %v4324_v37 = vcombine.low %v165_v33, %v165_v33  ;;  %v4326_v38 = vcombine.low %v164_v34, %v164_v34  ;;  %v4334_v40 = vcombine.high %v164_v34, %v164_v34  ;;  %v509_v46 = vld [vmem:[#allocation2 + $0x4] sm:$0xff] }
  0xf4   :  { %789 = vmatpush1.bf16.msra.mxu0 %v739_v36  ;;  %v4342_v44 = vcombine.high %v165_v33, %v165_v33  ;;  %v4365_v48 = vcombine.low %v509_v46, %v509_v46  ;;  %v4370_v49 = vcombine.high %v509_v46, %v509_v46 }
  0xf5   :  { %197 = vrot.lane.b32.xlu1 %v4324_v37, %s4196_s26  ;;  %193 = vrot.lane.b32.xlu0 %v4326_v38, %s4196_s26 }
  0xf6   :  { %3901 = vmatprep.subr.bf16.mxu0 %v4198_v42 }
  0xf9   :  { %176 = vrot.lane.b32.xlu1 %v175_v39, %s4197_s27  ;;  %195 = vrot.lane.b32.xlu0 %v4334_v40, %s4196_s26 }
  0xfd   :  { %201 = vrot.lane.b32.xlu1 %v4340_v43, %s4196_s26  ;;  %199 = vrot.lane.b32.xlu0 %v4342_v44, %s4196_s26 }
 0x101   :  { %352 = vrot.lane.b32.xlu1 %v4326_v38, %s4199_s28  ;;  %203 = vrot.lane.b32.xlu0 %v3651_v45, %s4196_s26 }
 0x105   :  { %356 = vrot.lane.b32.xlu1 %v4324_v37, %s4199_s28  ;;  %354 = vrot.lane.b32.xlu0 %v4334_v40, %s4199_s28 }
 0x109   :  { %360 = vrot.lane.b32.xlu1 %v4340_v43, %s4199_s28  ;;  %358 = vrot.lane.b32.xlu0 %v4342_v44, %s4199_s28 }
 0x10d   :  { %542 = vrot.lane.b32.xlu1 %v4310_v31, %s4200_s29  ;;  %362 = vrot.lane.b32.xlu0 %v3651_v45, %s4199_s28 }
 0x111   :  { %538 = vrot.lane.b32.xlu1 %v4365_v48, %s4200_s29  ;;  %714 = vrot.lane.b32.xlu0 %v3674_v47, %s4201_s9 }
 0x115   :  { %521 = vrot.lane.b32.xlu1 %v3674_v47, %s4202_s10  ;;  %540 = vrot.lane.b32.xlu0 %v4370_v49, %s4200_s29 }
 0x119   :  { %546 = vrot.lane.b32.xlu1 %v3667_v51, %s4200_s29  ;;  %544 = vrot.lane.b32.xlu0 %v4308_v30, %s4200_s29 }
 0x11d   :  { %887 = vrot.lane.b32.xlu1 %v4334_v40, %s4203_s3  ;;  %885 = vrot.lane.b32.xlu0 %v4326_v38, %s4203_s3 }
 0x121   :  { %548 = vrot.lane.b32.xlu1 %v3668_v52, %s4200_s29  ;;  %889 = vrot.lane.b32.xlu0 %v4324_v37, %s4203_s3 }
 0x125   :  { %891 = vrot.lane.b32.xlu1 %v4342_v44, %s4203_s3  ;;  %868 = vrot.lane.b32.xlu0 %v3674_v47, %s4204_s11 }
 0x129   :  { %895 = vrot.lane.b32.xlu1 %v3651_v45, %s4203_s3  ;;  %893 = vrot.lane.b32.xlu0 %v4340_v43, %s4203_s3 }
 0x12d   :  { %1077 = vrot.lane.b32.xlu1 %v4308_v30, %s4205_s12  ;;  %1075 = vrot.lane.b32.xlu0 %v4310_v31, %s4205_s12 }
 0x131   :  { %1054 = vrot.lane.b32.xlu1 %v3674_v47, %s4206_s13  ;;  %1079 = vrot.lane.b32.xlu0 %v3667_v51, %s4205_s12 }
 0x135   :  { %1073 = vrot.lane.b32.xlu1 %v4370_v49, %s4205_s12  ;;  %1268 = vrot.lane.b32.xlu0 %v4310_v31, %s4207_s14 }
 0x139   :  { %1266 = vrot.lane.b32.xlu1 %v4370_v49, %s4207_s14  ;;  %1071 = vrot.lane.b32.xlu0 %v4365_v48, %s4205_s12 }
 0x13d   :  { %1247 = vrot.lane.b32.xlu1 %v3674_v47, %s4208_s15  ;;  %1264 = vrot.lane.b32.xlu0 %v4365_v48, %s4207_s14 }
 0x141   :  { %1272 = vrot.lane.b32.xlu1 %v3667_v51, %s4207_s14  ;;  %1081 = vrot.lane.b32.xlu0 %v3668_v52, %s4205_s12 }
 0x145   :  { %1270 = vrot.lane.b32.xlu1 %v4308_v30, %s4207_s14  ;;  %1274 = vrot.lane.b32.xlu0 %v3668_v52, %s4207_s14 }
 0x149   :  { %1440 = vrot.lane.b32.xlu1 %v4334_v40, %s4209_s16  ;;  %1438 = vrot.lane.b32.xlu0 %v4326_v38, %s4209_s16 }
 0x14d   :  { %1421 = vrot.lane.b32.xlu1 %v3674_v47, %s4205_s12  ;;  %1442 = vrot.lane.b32.xlu0 %v4324_v37, %s4209_s16 }
 0x151   :  { %1448 = vrot.lane.b32.xlu1 %v3651_v45, %s4209_s16  ;;  %1446 = vrot.lane.b32.xlu0 %v4340_v43, %s4209_s16 }
 0x155   :  { %1628 = vrot.lane.b32.xlu1 %v4310_v31, %s4210_s17  ;;  %1444 = vrot.lane.b32.xlu0 %v4342_v44, %s4209_s16 }
 0x159   :  { %1624 = vrot.lane.b32.xlu1 %v4365_v48, %s4210_s17  ;;  %1626 = vrot.lane.b32.xlu0 %v4370_v49, %s4210_s17 }
 0x15d   :  { %1630 = vrot.lane.b32.xlu1 %v4308_v30, %s4210_s17  ;;  %1607 = vrot.lane.b32.xlu0 %v3674_v47, %s4211_s18 }
 0x161   :  { %1634 = vrot.lane.b32.xlu1 %v3668_v52, %s4210_s17  ;;  %1632 = vrot.lane.b32.xlu0 %v3667_v51, %s4210_s17 }
 0x167   :  { %v198_v53 = vpop.permute.xlu1 %197  ;;  %v194_v54 = vpop.permute.xlu0 %193 }
 0x16b   :  { %v177_v55 = vpop.permute.xlu1 %176  ;;  %v196_v56 = vpop.permute.xlu0 %195 }
 0x16c   :  { %v207_v57 = vsel %vm205_vm2, %v196_v56, %v198_v53  ;;  %v206_v58 = vsel %vm205_vm2, %v194_v54, %v196_v56 }
 0x16d   :  { %3652 = vmatprep.subr.msk.bf16.mxu1 %vm215_vm1, %v207_v57  ;;  %v217_v59 = vsel %vm215_vm1, %v206_v58, 0 }
 0x16e   :  { %232 = vmatpush1.bf16.msra.mxu1 %v217_v59 }
 0x16f   :  { %v202_v60 = vpop.permute.xlu1 %201  ;;  %v200_v61 = vpop.permute.xlu0 %199 }
 0x170   :  { %v208_v62 = vsel %vm205_vm2, %v198_v53, %v200_v61  ;;  %v209_v63 = vsel %vm205_vm2, %v200_v61, %v202_v60 }
 0x171   :  { %3653 = vmatmul.mubr.msk.bf16.vlgmr.msra.gmra.mrb[0].mxu1 %vm211_vm3, %v177_v55  ;;  %3654 = vmatprep.subr.msk.bf16.mxu1 %vm215_vm1, %v209_v63  ;;  %v223_v0 = vsel %vm215_vm1, %v208_v62, 0 }
 0x172   :  { %273 = vmatpush1.bf16.msra.mxu1 %v223_v0  ;;  %304 = vmatprep.mubr.bf16.mxu1 %v4194_v1 }
 0x173   :  { %v353_v2 = vpop.permute.xlu1 %352  ;;  %v204_v3 = vpop.permute.xlu0 %203  ;;  %3883 = vmatprep.subr.bf16.mxu1 %v4198_v42 }
 0x174   :  { %v210_v4 = vsel %vm205_vm2, %v202_v60, %v204_v3 }
 0x175   :  { %v229_v8 = vsel %vm215_vm1, %v210_v4, 0 }
 0x177   :  { %v357_v5 = vpop.permute.xlu1 %356  ;;  %v355_v6 = vpop.permute.xlu0 %354 }
 0x178   :  { %v366_v7 = vsel %vm364_vm4, %v355_v6, %v357_v5  ;;  %v365_v11 = vsel %vm364_vm4, %v353_v2, %v355_v6 }
 0x179   :  { %3655 = vmatmul.mubr.msk.bf16.vlgmr.msra.gmra.mrb[4].mxu1 %vm211_vm3, %v177_v55  ;;  %v374_v15 = vsel %vm215_vm1, %v365_v11, 0 }
 0x17a   :  { %3884 = vmatpush3.bf16.msra.mxu1 %v229_v8  ;;  %3885 = vmatprep.mubr.msk.bf16.mxu1 %vm4212_vm5, %v4198_v42 }
 0x17b   :  { %3657 = vmatprep.subr.msk.bf16.mxu1 %vm215_vm1, %v366_v7  ;;  %v361_v9 = vpop.permute.xlu1 %360  ;;  %v359_v10 = vpop.permute.xlu0 %358 }
 0x17c   :  { %v368_v16 = vsel %vm364_vm4, %v359_v10, %v361_v9  ;;  %v367_v20 = vsel %vm364_vm4, %v357_v5, %v359_v10 }
 0x17d   :  { %v380_v23 = vsel %vm215_vm1, %v367_v20, 0 }
 0x17f   :  { %v4451_v12 = vpop.permute.xlu1 %542  ;;  %v363_v13 = vpop.permute.xlu0 %362 }
 0x180   :  { %v369_v26 = vsel %vm364_vm4, %v361_v9, %v363_v13 }
 0x181   :  { %3886 = vmatmul.mubr.msk.bf16.vlgmr.msra.gmra.mrb[8].mxu1 %vm211_vm3, %v177_v55  ;;  %v386_v30 = vsel %vm215_vm1, %v369_v26, 0 }
 0x182   :  { %389 = vmatpush1.bf16.msra.mxu1 %v374_v15  ;;  %420 = vmatprep.mubr.bf16.mxu1 %v4194_v1 }
 0x183   :  { %3659 = vmatprep.subr.msk.bf16.mxu1 %vm215_vm1, %v368_v16  ;;  %v539_v17 = vpop.permute.xlu1 %538  ;;  %v4458_v18 = vpop.permute.xlu0 %714 }
 0x184   :  { %3683 = vmatmul.mubr.msk.bf16.vlgmr.msra.gmra.mrb[4].mxu0 %vm211_vm3, %v4458_v18 }
 0x185   :  { %3902 = vmatpush3.bf16.msra.mxu0 %v745_v19  ;;  %3903 = vmatprep.mubr.msk.bf16.mxu0 %vm4212_vm5, %v4198_v42 }
 0x187   :  { %v4466_v21 = vpop.permute.xlu1 %521  ;;  %v541_v22 = vpop.permute.xlu0 %540 }
 0x188   :  { %v552_v33 = vsel %vm550_vm6, %v541_v22, %v4451_v12  ;;  %v551_v39 = vsel %vm550_vm6, %v539_v17, %v541_v22 }
 0x189   :  { %3658 = vmatmul.mubr.msk.bf16.vlgmr.msra.gmra.mrb[0].mxu1 %vm211_vm3, %v4318_v35  ;;  %v560_v43 = vsel %vm215_vm1, %v551_v39, 0 }
 0x18a   :  { %430 = vmatpush1.bf16.msra.mxu1 %v380_v23  ;;  %461 = vmatprep.mubr.bf16.mxu1 %v4194_v1 }
 0x18b   :  { %v547_v24 = vpop.permute.xlu1 %546  ;;  %v545_v25 = vpop.permute.xlu0 %544  ;;  %3889 = vmatprep.subr.bf16.mxu1 %v4198_v42 }
 0x18c   :  { %3904 = vmatmul.mubr.msk.bf16.vlgmr.msra.gmra.mrb[8].mxu0 %vm211_vm3, %v4458_v18  ;;  %v554_v45 = vsel %vm550_vm6, %v545_v25, %v547_v24  ;;  %v553_v51 = vsel %vm550_vm6, %v4451_v12, %v545_v25 }
 0x18d   :  { %953 = vmatprep.mubr.bf16.mxu0 %v4194_v1  ;;  %v566_v56 = vsel %vm215_vm1, %v553_v51, 0 }
 0x18f   :  { %v888_v27 = vpop.permute.xlu1 %887  ;;  %v886_v29 = vpop.permute.xlu0 %885 }
 0x190   :  { %v898_v31 = vsel %vm897_vm7, %v886_v29, %v888_v27 }
 0x191   :  { %3660 = vmatmul.mubr.msk.bf16.vlgmr.msra.gmra.mrb[4].mxu1 %vm211_vm3, %v4318_v35  ;;  %v907_v38 = vsel %vm215_vm1, %v898_v31, 0 }
 0x192   :  { %3890 = vmatpush3.bf16.msra.mxu1 %v386_v30  ;;  %3891 = vmatprep.mubr.msk.bf16.mxu1 %vm4212_vm5, %v4198_v42 }
 0x193   :  { %3669 = vmatprep.subr.msk.bf16.mxu1 %vm215_vm1, %v552_v33  ;;  %v549_v34 = vpop.permute.xlu1 %548  ;;  %v890_v36 = vpop.permute.xlu0 %889 }
 0x194   :  { %v899_v37 = vsel %vm897_vm7, %v888_v27, %v890_v36  ;;  %v555_v59 = vsel %vm550_vm6, %v547_v24, %v549_v34 }
 0x195   :  { %3691 = vmatprep.subr.msk.bf16.mxu0 %vm215_vm1, %v899_v37  ;;  %v572_v63 = vsel %vm215_vm1, %v555_v59, 0 }
 0x196   :  { %922 = vmatpush1.bf16.msra.mxu0 %v907_v38 }
 0x197   :  { %v892_v40 = vpop.permute.xlu1 %891  ;;  %v869_v41 = vpop.permute.xlu0 %868 }
 0x198   :  { %v900_v44 = vsel %vm897_vm7, %v890_v36, %v892_v40 }
 0x199   :  { %3892 = vmatmul.mubr.msk.bf16.vlgmr.msra.gmra.mrb[8].mxu1 %vm211_vm3, %v4318_v35  ;;  %3692 = vmatmul.mubr.msk.bf16.vlgmr.msra.gmra.mrb[12].mxu0 %vm211_vm3, %v869_v41  ;;  %v913_v35 = vsel %vm215_vm1, %v900_v44, 0 }
 0x19a   :  { %575 = vmatpush1.bf16.msra.mxu1 %v560_v43  ;;  %606 = vmatprep.mubr.bf16.mxu1 %v4194_v1 }
 0x19b   :  { %3671 = vmatprep.subr.msk.bf16.mxu1 %vm215_vm1, %v554_v45  ;;  %v896_v46 = vpop.permute.xlu1 %895  ;;  %v894_v47 = vpop.permute.xlu0 %893  ;;  %994 = vmatprep.mubr.bf16.mxu0 %v4194_v1 }
 0x19c   :  { %v901_v50 = vsel %vm897_vm7, %v892_v40, %v894_v47  ;;  %v902_v52 = vsel %vm897_vm7, %v894_v47, %v896_v46 }
 0x19d   :  { %3693 = vmatprep.subr.msk.bf16.mxu0 %vm215_vm1, %v901_v50  ;;  %v919_v55 = vsel %vm215_vm1, %v902_v52, 0 }
 0x19e   :  { %963 = vmatpush1.bf16.msra.mxu0 %v913_v35 }
 0x19f   :  { %v1078_v53 = vpop.permute.xlu1 %1077  ;;  %v1076_v54 = vpop.permute.xlu0 %1075  ;;  %3907 = vmatprep.subr.bf16.mxu0 %v4198_v42 }
 0x1a1   :  { %3670 = vmatmul.mubr.msk.bf16.vlgmr.msra.gmra.mrb[0].mxu1 %vm211_vm3, %v4466_v21  ;;  %3694 = vmatmul.mubr.msk.bf16.vlgmr.msra.gmra.mrb[16].mxu0 %vm211_vm3, %v869_v41 }
 0x1a2   :  { %616 = vmatpush1.bf16.msra.mxu1 %v566_v56  ;;  %3908 = vmatpush3.bf16.msra.mxu0 %v919_v55 }
 0x1a3   :  { %v1055_v57 = vpop.permute.xlu1 %1054  ;;  %v1080_v58 = vpop.permute.xlu0 %1079  ;;  %647 = vmatprep.mubr.bf16.mxu1 %v4194_v1  ;;  %3895 = vmatprep.subr.bf16.mxu1 %v4198_v42 }
 0x1a4   :  { %3909 = vmatprep.mubr.msk.bf16.mxu0 %vm4212_vm5, %v4198_v42  ;;  %v1087_v7 = vsel %vm1083_vm8, %v1078_v53, %v1080_v58 }
 0x1a7   :  { %v1074_v60 = vpop.permute.xlu1 %1073  ;;  %v1269_v61 = vpop.permute.xlu0 %1268 }
 0x1a8   :  { %v1085_v62 = vsel %vm1083_vm8, %v1074_v60, %v1076_v54 }
 0x1a9   :  { %3672 = vmatmul.mubr.msk.bf16.vlgmr.msra.gmra.mrb[4].mxu1 %vm211_vm3, %v4466_v21  ;;  %3910 = vmatmul.mubr.msk.bf16.vlgmr.msra.gmra.mrb[20].mxu0 %vm211_vm3, %v869_v41 }
 0x1aa   :  { %3896 = vmatpush3.bf16.msra.mxu1 %v572_v63  ;;  %3703 = vmatprep.subr.msk.bf16.mxu0 %vm215_vm1, %v1085_v62 }
 0x1ab   :  { %3680 = vmatprep.subr.msk.bf16.mxu1 %vm215_vm1, %v4370_v49  ;;  %v1267_v0 = vpop.permute.xlu1 %1266  ;;  %v1072_v2 = vpop.permute.xlu0 %1071  ;;  %3897 = vmatprep.mubr.msk.bf16.mxu1 %vm4212_vm5, %v4198_v42  ;;  %v733_v49 = vsel %vm215_vm1, %v4365_v48, 0  ;;  %v1086_v48 = vsel %vm1083_vm8, %v1076_v54, %v1078_v53 }
 0x1ac   :  { %v1084_v3 = vsel %vm1083_vm8, %v1072_v2, %v1074_v60  ;;  %1139 = vmatprep.mubr.bf16.mxu0 %v4194_v1  ;;  %v1099_v16 = vsel %vm215_vm1, %v1086_v48, 0  ;;  %v1278_v19 = vsel %vm1276_vm9, %v1267_v0, %v1269_v61 }
 0x1ad   :  { %v1093_v4 = vsel %vm215_vm1, %v1084_v3, 0 }
 0x1ae   :  { %1108 = vmatpush1.bf16.msra.mxu0 %v1093_v4 }
 0x1af   :  { %v4529_v5 = vpop.permute.xlu1 %1247  ;;  %v1265_v6 = vpop.permute.xlu0 %1264  ;;  %3913 = vmatprep.subr.bf16.mxu0 %v4198_v42 }
 0x1b0   :  { %v1277_v22 = vsel %vm1276_vm9, %v1265_v6, %v1267_v0 }
 0x1b1   :  { %3898 = vmatmul.mubr.msk.bf16.vlgmr.msra.gmra.mrb[8].mxu1 %vm211_vm3, %v4466_v21  ;;  %3704 = vmatmul.mubr.msk.bf16.vlgmr.msra.gmra.mrb[24].mxu0 %vm211_vm3, %v1055_v57  ;;  %v1286_v24 = vsel %vm215_vm1, %v1277_v22, 0 }
 0x1b2   :  { %748 = vmatpush1.bf16.msra.mxu1 %v733_v49  ;;  %779 = vmatprep.mubr.bf16.mxu1 %v4194_v1 }
 0x1b3   :  { %3705 = vmatprep.subr.msk.bf16.mxu1 %vm215_vm1, %v1087_v7  ;;  %v1273_v8 = vpop.permute.xlu1 %1272  ;;  %v1082_v9 = vpop.permute.xlu0 %1081  ;;  %3915 = vmatprep.mubr.msk.bf16.mxu0 %vm4212_vm5, %v4198_v42 }
 0x1b4   :  { %v1088_v10 = vsel %vm1083_vm8, %v1080_v58, %v1082_v9 }
 0x1b5   :  { %v1105_v11 = vsel %vm215_vm1, %v1088_v10, 0 }
 0x1b6   :  { %3914 = vmatpush3.bf16.msra.mxu0 %v1105_v11 }
 0x1b7   :  { %v1271_v12 = vpop.permute.xlu1 %1270  ;;  %v1275_v13 = vpop.permute.xlu0 %1274 }
 0x1b8   :  { %v1279_v14 = vsel %vm1276_vm9, %v1269_v61, %v1271_v12  ;;  %v1280_v15 = vsel %vm1276_vm9, %v1271_v12, %v1273_v8  ;;  %v1281_v27 = vsel %vm1276_vm9, %v1273_v8, %v1275_v13 }
 0x1b9   :  { %v1292_v17 = vsel %vm215_vm1, %v1279_v14, 0  ;;  %3681 = vmatmul.mubr.msk.bf16.vlgmr.msra.gmra.mrb[12].mxu1 %vm211_vm3, %v4458_v18  ;;  %3916 = vmatmul.mubr.msk.bf16.vlgmr.msra.gmra.mrb[28].mxu0 %vm211_vm3, %v1055_v57  ;;  %v1298_v34 = vsel %vm215_vm1, %v1281_v27, 0 }
 0x1ba   :  { %1149 = vmatpush1.bf16.msra.mxu1 %v1099_v16  ;;  %3717 = vmatprep.subr.msk.bf16.mxu0 %vm215_vm1, %v1280_v15 }
 0x1bb   :  { %3715 = vmatprep.subr.msk.bf16.mxu1 %vm215_vm1, %v1278_v19  ;;  %1342 = vmatpush1.bf16.msra.mxu0 %v1292_v17  ;;  %v1441_v20 = vpop.permute.xlu1 %1440  ;;  %v1439_v21 = vpop.permute.xlu0 %1438 }
 0x1bc   :  { %1180 = vmatprep.mubr.bf16.mxu1 %v4194_v1  ;;  %1373 = vmatprep.mubr.bf16.mxu0 %v4194_v1  ;;  %v1451_v40 = vsel %vm1450_vm10, %v1439_v21, %v1441_v20 }
 0x1bd   :  { %v1460_v44 = vsel %vm215_vm1, %v1451_v40, 0 }
 0x1bf   :  { %v1422_v23 = vpop.permute.xlu1 %1421  ;;  %v1443_v18 = vpop.permute.xlu0 %1442 }
 0x1c0   :  { %v1452_v37 = vsel %vm1450_vm10, %v1441_v20, %v1443_v18 }
 0x1c1   :  { %3706 = vmatmul.mubr.msk.bf16.vlgmr.msra.gmra.mrb[16].mxu1 %vm211_vm3, %v1055_v57  ;;  %3718 = vmatmul.mubr.msk.bf16.vlgmr.msra.gmra.mrb[32].mxu0 %vm211_vm3, %v4529_v5 }
 0x1c2   :  { %1301 = vmatpush1.bf16.msra.mxu1 %v1286_v24  ;;  %1332 = vmatprep.mubr.bf16.mxu1 %v4194_v1 }
 0x1c3   :  { %v1449_v25 = vpop.permute.xlu1 %1448  ;;  %v1447_v26 = vpop.permute.xlu0 %1446  ;;  %3919 = vmatprep.subr.bf16.mxu1 %v4198_v42  ;;  %1547 = vmatprep.mubr.bf16.mxu0 %v4194_v1 }
 0x1c4   :  { %v1455_v35 = vsel %vm1450_vm10, %v1447_v26, %v1449_v25  ;;  %v1800_v25 = vsub.s32 4, %v4306_v28 }
 0x1c5   :  { %v1472_v51 = vsel %vm215_vm1, %v1455_v35, 0  ;;  %v1796_v35 = vsub.s32 3, %v4306_v28 }
 0x1c7   :  { %v1629_v29 = vpop.permute.xlu1 %1628  ;;  %v1445_v30 = vpop.permute.xlu0 %1444 }
 0x1c8   :  { %v1453_v31 = vsel %vm1450_vm10, %v1443_v18, %v1445_v30  ;;  %v1454_v33 = vsel %vm1450_vm10, %v1445_v30, %v1447_v26 }
 0x1c9   :  { %v1466_v36 = vsel %vm215_vm1, %v1453_v31, 0  ;;  %3716 = vmatmul.mubr.msk.bf16.vlgmr.msra.gmra.mrb[20].mxu1 %vm211_vm3, %v4529_v5  ;;  %3728 = vmatprep.subr.msk.bf16.mxu0 %vm215_vm1, %v1454_v33  ;;  %v1788_v31 = vsub.s32 0, %v4306_v28 }
 0x1ca   :  { %3920 = vmatpush3.bf16.msra.mxu1 %v1298_v34  ;;  %1516 = vmatpush1.bf16.msra.mxu0 %v1466_v36  ;;  %v30_v36 = vld [vmem:[%s4963_s6] ss:$2 sm:$0x1f] }
 0x1cb   :  { %3726 = vmatprep.subr.msk.bf16.mxu1 %vm215_vm1, %v1452_v37  ;;  %v1625_v38 = vpop.permute.xlu1 %1624  ;;  %v1627_v39 = vpop.permute.xlu0 %1626  ;;  %3921 = vmatprep.mubr.msk.bf16.mxu1 %vm4212_vm5, %v4198_v42  ;;  %v1792_v37 = vsub.s32 1, %v4306_v28 }
 0x1cc   :  { %v1638_v52 = vsel %vm1636_vm11, %v1627_v39, %v1629_v29  ;;  %v1637_v53 = vsel %vm1636_vm11, %v1625_v38, %v1627_v39  ;;  %v4616_v38 = vrot.slane %v30_v36, %v1800_v25  ;;  %v4618_v39 = vrot.slane %v30_v36, %v1788_v31 }
 0x1cd   :  { %3729 = vmatmul.mubr.msk.bf16.vlgmr.msra.gmra.mrb[32].mxu0 %vm211_vm3, %v1422_v23  ;;  %v1646_v54 = vsel %vm215_vm1, %v1637_v53, 0  ;;  %v4620_v40 = vrot.slane %v30_v36, %v1792_v37 }
 0x1ce   :  { %1733 = vmatprep.mubr.bf16.mxu0 %v4194_v1 }
 0x1cf   :  { %v1631_v41 = vpop.permute.xlu1 %1630  ;;  %v1608_v43 = vpop.permute.xlu0 %1607 }
 0x1d0   :  { %v1639_v45 = vsel %vm1636_vm11, %v1629_v29, %v1631_v41 }
 0x1d1   :  { %3922 = vmatmul.mubr.msk.bf16.vlgmr.msra.gmra.mrb[24].mxu1 %vm211_vm3, %v4529_v5  ;;  %v1652_v50 = vsel %vm215_vm1, %v1639_v45, 0 }
 0x1d2   :  { %1475 = vmatpush1.bf16.msra.mxu1 %v1460_v44  ;;  %1506 = vmatprep.mubr.bf16.mxu1 %v4194_v1 }
 0x1d3   :  { %v1633_v46 = vpop.permute.xlu0 %1632  ;;  %3925 = vmatprep.subr.bf16.mxu1 %v4198_v42  ;;  %v1635_v55 = vpop.permute.xlu1 %1634 }
 0x1d4   :  { %v1640_v47 = vsel %vm1636_vm11, %v1631_v41, %v1633_v46  ;;  %v1641_v56 = vsel %vm1636_vm11, %v1633_v46, %v1635_v55 }
 0x1d5   :  { %3740 = vmatprep.subr.msk.bf16.mxu0 %vm215_vm1, %v1640_v47  ;;  %v1658_v57 = vsel %vm215_vm1, %v1641_v56, 0 }
 0x1d6   :  { %1702 = vmatpush1.bf16.msra.mxu0 %v1652_v50 }
 0x1d9   :  { %3727 = vmatmul.mubr.msk.bf16.vlgmr.msra.gmra.mrb[20].mxu1 %vm211_vm3, %v1422_v23  ;;  %3741 = vmatmul.mubr.msk.bf16.vlgmr.msra.gmra.mrb[32].mxu0 %vm211_vm3, %v1608_v43 }
 0x1da   :  { %3926 = vmatpush3.bf16.msra.mxu1 %v1472_v51  ;;  %3927 = vmatprep.mubr.msk.bf16.mxu1 %vm4212_vm5, %v4198_v42 }
 0x1db   :  { %3738 = vmatprep.subr.msk.bf16.mxu1 %vm215_vm1, %v1638_v52  ;;  %2023 = vmatprep.mubr.bf16.mxu0 %v4194_v1 }
 0x1e1   :  { %3928 = vmatmul.mubr.msk.bf16.vlgmr.msra.gmra.mrb[24].mxu1 %vm211_vm3, %v1422_v23 }
 0x1e2   :  { %1661 = vmatpush1.bf16.msra.mxu1 %v1646_v54  ;;  %1692 = vmatprep.mubr.bf16.mxu1 %v4194_v1 }
 0x1e3   :  { %3931 = vmatprep.subr.bf16.mxu1 %v4198_v42 }
 0x1e9   :  { %3739 = vmatmul.mubr.msk.bf16.vlgmr.msra.gmra.mrb[20].mxu1 %vm211_vm3, %v1608_v43 }
 0x1ea   :  { %3932 = vmatpush3.bf16.msra.mxu1 %v1658_v57  ;;  %3933 = vmatprep.mubr.msk.bf16.mxu1 %vm4212_vm5, %v4198_v42 }
 0x1f1   :  { %3934 = vmatmul.mubr.msk.bf16.vlgmr.msra.gmra.mrb[24].mxu1 %vm211_vm3, %v1608_v43 }
 0x1f2   :  { %2537 = vmatprep.mubr.bf16.mxu1 %v4194_v1 }
 0x257   :  { %v822_v58 = vpop.f32.mrb[4].mxu0 }
 0x258   :  { %v823_v59 = vpop.f32.mrb[5].mxu0 }
 0x259   :  { %v825_v60 = vpop.f32.mrb[6].mxu0 }
 0x25a   :  { %v826_v61 = vpop.f32.mrb[7].mxu0 }
 0x25f   :  { %v862_v62 = vpop.f32.mrb[8].mxu0 }
 0x260   :  { %v3905_v63 = vpop.f32.mrb[9].mxu0 }
 0x261   :  { %v865_v0 = vpop.f32.mrb[10].mxu0 }
 0x262   :  { %v3906_v2 = vpop.f32.mrb[11].mxu0 }
 0x26c   :  { %v955_v3 = vpop.f32.mrb[12].mxu0 }
 0x26d   :  { %v957_v4 = vpop.f32.mrb[13].mxu0 }
 0x26e   :  { %v959_v5 = vpop.f32.mrb[14].mxu0 }
 0x26f   :  { %v960_v6 = vpop.f32.mrb[15].mxu0 }
 0x274   :  { %v608_v49 = vpop.f32.mrb[0].mxu1  ;;  %v996_v7 = vpop.f32.mrb[16].mxu0 }
 0x275   :  { %v610_v8 = vpop.f32.mrb[1].mxu1  ;;  %v997_v9 = vpop.f32.mrb[17].mxu0  ;;  %v1806_v54 = vmul.f32 %v4618_v39, %v608_v49  ;;  %v3632_v49 = vld [vmem:[%s4963_s6 + $0x1] ss:$2 sm:$0x1f] }
 0x276   :  { %v998_v10 = vadd.f32 %v997_v9, %v823_v59  ;;  %v612_v11 = vpop.f32.mrb[2].mxu1  ;;  %v999_v48 = vpop.f32.mrb[18].mxu0  ;;  %v1807_v59 = vmul.f32 %v4620_v40, %v610_v8  ;;  %v4632_v7 = vrot.slane %v3632_v49, %v1796_v35 }
 0x277   :  { %v613_v12 = vpop.f32.mrb[3].mxu1  ;;  %v1000_v13 = vpop.f32.mrb[19].mxu0 }
 0x27c   :  { %v649_v14 = vpop.f32.mrb[4].mxu1  ;;  %v1036_v15 = vpop.f32.mrb[20].mxu0 }
 0x27d   :  { %v1037_v16 = vadd.f32 %v1036_v15, %v862_v62  ;;  %v650_v17 = vpop.f32.mrb[5].mxu1  ;;  %v3911_v19 = vpop.f32.mrb[21].mxu0  ;;  %v4626_v62 = vrot.slane %v30_v36, %v1796_v35  ;;  %v4637_v14 = vrot.slane %v3632_v49, %v1788_v31 }
 0x27e   :  { %v652_v20 = vpop.f32.mrb[6].mxu1  ;;  %v1039_v21 = vpop.f32.mrb[22].mxu0 }
 0x27f   :  { %v653_v22 = vpop.f32.mrb[7].mxu1  ;;  %v3912_v23 = vpop.f32.mrb[23].mxu0  ;;  %v1808_v28 = vmul.f32 %v4626_v62, %v650_v17 }
 0x284   :  { %v689_v18 = vpop.f32.mrb[8].mxu1  ;;  %v1141_v24 = vpop.f32.mrb[24].mxu0 }
 0x285   :  { %v3899_v26 = vpop.f32.mrb[9].mxu1  ;;  %v1143_v27 = vpop.f32.mrb[25].mxu0  ;;  %v1809_v44 = vmul.f32 %v4616_v38, %v689_v18  ;;  %v4643_v18 = vrot.slane %v3632_v49, %v1800_v25 }
 0x286   :  { %v692_v29 = vpop.f32.mrb[10].mxu1  ;;  %v1145_v30 = vpop.f32.mrb[26].mxu0 }
 0x287   :  { %v3900_v33 = vpop.f32.mrb[11].mxu1  ;;  %v1146_v34 = vpop.f32.mrb[27].mxu0 }
 0x28c   :  { %v781_v41 = vpop.f32.mrb[12].mxu1  ;;  %v1222_v43 = vpop.f32.mrb[28].mxu0 }
 0x28d   :  { %v956_v45 = vadd.f32 %v955_v3, %v781_v41  ;;  %v1231_v46 = vadd.f32 %v1222_v43, %v1037_v16  ;;  %v783_v47 = vpop.f32.mrb[13].mxu1  ;;  %v3917_v50 = vpop.f32.mrb[29].mxu0 }
 0x28e   :  { %v958_v51 = vadd.f32 %v957_v4, %v783_v47  ;;  %v785_v52 = vpop.f32.mrb[14].mxu1  ;;  %v1225_v53 = vpop.f32.mrb[30].mxu0 }
 0x28f   :  { %v1228_v55 = vadd.f32 %v1141_v24, %v956_v45  ;;  %v1813_v56 = vadd.f32 %v1809_v44, %v1231_v46  ;;  %v786_v57 = vpop.f32.mrb[15].mxu1  ;;  %v3918_v58 = vpop.f32.mrb[31].mxu0 }
 0x290   :  { %v1229_v60 = vadd.f32 %v1143_v27, %v958_v51 }
 0x291   :  { %v1810_v61 = vadd.f32 %v1806_v54, %v1228_v55 }
 0x292   :  { %v1811_v63 = vadd.f32 %v1807_v59, %v1229_v60 }
 0x294   :  { %v1182_v0 = vpop.f32.mrb[16].mxu1 }
 0x295   :  { %v1183_v2 = vpop.f32.mrb[17].mxu1 }
 0x296   :  { %v1230_v3 = vadd.f32 %v1183_v2, %v998_v10  ;;  %v1185_v4 = vpop.f32.mrb[18].mxu1  ;;  %v4639_v10 = vrot.slane %v3632_v49, %v1792_v37 }
 0x297   :  { %v1186_v5 = vpop.f32.mrb[19].mxu1 }
 0x298   :  { %v1812_v6 = vadd.f32 %v1808_v28, %v1230_v3  ;;  %v4213_v28 = vmov 1   ;;  %v1843_v3 = vld [vmem:[%s4964_s5] sm:$0xf] }
 0x299   :  { %4114 = vset.pattern.permute.xlu1 %v4213_v28 }
 0x2ac   :  { %v1735_v8 = vpop.f32.mrb[32].mxu0 }
 0x2ad   :  { %v1736_v9 = vpop.f32.mrb[33].mxu0 }
 0x2ae   :  { %v1837_v11 = vmul.f32 %v4632_v7, %v1736_v9  ;;  %v1738_v48 = vpop.f32.mrb[34].mxu0  ;;  %v4664_v9 = vld [vmem:[%s4965_s4] sm:$0x3] }
 0x2af   :  { %v1739_v12 = vpop.f32.mrb[35].mxu0 }
 0x2b0   :  { %v4635_v13 = vadd.f32 %v1837_v11, %v1812_v6  ;;  %v1936_v11 = vrot.slane %v4664_v9, %v4313_v32 }
 0x2b2   :  { %v1864_v45 = vmul.f32 %v4635_v13, %v4635_v13  ;;  %v1858_v46 = vsel %vm215_vm1, %v4635_v13, 0.0 }
 0x2b4   :  { %v1866_v51 = vsel %vm215_vm1, %v1864_v45, 0.0 }
 0x2bc   :  { %v1694_v15 = vpop.f32.mrb[20].mxu1 }
 0x2bd   :  { %v1835_v16 = vmul.f32 %v4637_v14, %v1694_v15  ;;  %v1696_v17 = vpop.f32.mrb[21].mxu1 }
 0x2be   :  { %v1836_v19 = vmul.f32 %v4639_v10, %v1696_v17  ;;  %v1698_v20 = vpop.f32.mrb[22].mxu1 }
 0x2bf   :  { %v1839_v21 = vadd.f32 %v1835_v16, %v1810_v61  ;;  %v1699_v22 = vpop.f32.mrb[23].mxu1 }
 0x2c0   :  { %v1840_v23 = vadd.f32 %v1836_v19, %v1811_v63 }
 0x2c1   :  { %v1844_v24 = vsel %vm215_vm1, %v1839_v21, 0.0  ;;  %v1850_v26 = vmul.f32 %v1839_v21, %v1839_v21 }
 0x2c2   :  { %v1845_v27 = vsel %vm215_vm1, %v1840_v23, 0.0  ;;  %v1851_v29 = vmul.f32 %v1840_v23, %v1840_v23 }
 0x2c3   :  { %v1846_v30 = vadd.f32 %v1845_v27, %v1844_v24  ;;  %v1852_v33 = vsel %vm215_vm1, %v1850_v26, 0.0 }
 0x2c4   :  { %v1775_v31 = vpop.f32.mrb[24].mxu1  ;;  %v1853_v34 = vsel %vm215_vm1, %v1851_v29, 0.0 }
 0x2c5   :  { %v1838_v36 = vmul.f32 %v4643_v18, %v1775_v31  ;;  %1847 = vadd.xlane.f32.xlu0 %v1846_v30  ;;  %v3935_v37 = vpop.f32.mrb[25].mxu1  ;;  %v1854_v44 = vadd.f32 %v1853_v34, %v1852_v33 }
 0x2c6   :  { %v1778_v41 = vpop.f32.mrb[26].mxu1 }
 0x2c7   :  { %v1842_v43 = vadd.f32 %v1838_v36, %v1813_v56  ;;  %v3936_v25 = vpop.f32.mrb[27].mxu1 }
 0x2c9   :  { %1855 = vadd.xlane.f32.xlu0 %v1854_v44  ;;  %v1859_v47 = vsel %vm215_vm1, %v1842_v43, 0.0  ;;  %v1865_v50 = vmul.f32 %v1842_v43, %v1842_v43 }
 0x2ca   :  { %v1860_v35 = vadd.f32 %v1859_v47, %v1858_v46 }
 0x2cb   :  { %v1867_v52 = vsel %vm215_vm1, %v1865_v50, 0.0  ;;  %v4685_v50 = vld.sshfl [vmem:[%s4965_s4] sm:$0x3 pattern:$0x76325410]  ;;  %s4216_s4 = smov 100  }
 0x2cc   :  { %1861 = vadd.xlane.f32.xlu1 %v1860_v35  ;;  %v1868_v53 = vadd.f32 %v1867_v52, %v1866_v51 }
 0x2ce   :  { %1869 = vadd.xlane.f32.xlu0 %v1868_v53 }
 0x352   :  { %v1848_v54 = vpop.xlane.xlu0 %1847 }
 0x356   :  { %v1856_v55 = vpop.xlane.xlu0 %1855 }
 0x359   :  { %v1862_v56 = vpop.xlane.xlu1 %1861 }
 0x35a   :  { %v1863_v57 = vadd.f32 %v1862_v56, %v1848_v54 }
 0x35b   :  { %v1870_v58 = vpop.xlane.xlu0 %1869 }
 0x35c   :  { %v1872_v59 = vmul.f32 0.001953125, %v1863_v57  ;;  %v1871_v60 = vadd.f32 %v1870_v58, %v1856_v55 }
 0x35e   :  { %v1874_v61 = vmul.f32 %v1872_v59, %v1872_v59  ;;  %v1873_v63 = vmul.f32 0.001953125, %v1871_v60 }
 0x360   :  { %v1875_v0 = vsub.f32 %v1873_v63, %v1874_v61 }
 0x362   :  { %v1876_v2 = vadd.f32 1e-05, %v1875_v0 }
 0x364   :  { %4190 = vrsqrt.f32 %v1876_v2 }
 0x36e   :  { %v4191_v4 = vpop.eup %4190 }
 0x36f   :  { %v1878_v5 = vmul.f32 %v4191_v4, %v1843_v3 }
 0x371   :  { %1887 = vperm.xlu0 %4113, %v1878_v5   ;;  %v1879_v6 = vmul.f32 %v1878_v5, %v1872_v59 }
 0x373   :  { %1881 = vrot.lane.b32.xlu1 %v1879_v6, %s4196_s26 }
 0x3e5   :  { %v1882_v49 = vpop.permute.xlu1 %1881 }
 0x3e6   :  { %v1884_v8 = vsub.f32 %v1843_v3, %v1882_v49 }
 0x3e8   :  { %1896 = vperm.xlu1 %4114, %v1884_v8  }
 0x3ec   :  { %1937 = vrot.lane.b32.xlu1 %v1936_v11, %s4214_s24 }
 0x3f0   :  { %v1888_v48 = vpop.permute.xlu0 %1887 }
 0x3f1   :  { %v1890_v12 = vmul.f32 %v1888_v48, %v1839_v21  ;;  %v1891_v15 = vmul.f32 %v1888_v48, %v1840_v23  ;;  %v1892_v16 = vmul.f32 %v1888_v48, %v4635_v13  ;;  %v1893_v17 = vmul.f32 %v1888_v48, %v1842_v43 }
 0x467   :  { %v1897_v19 = vpop.permute.xlu1 %1896 }
 0x468   :  { %v1899_v20 = vadd.f32 %v1897_v19, %v1890_v12  ;;  %v1900_v22 = vadd.f32 %v1897_v19, %v1891_v15  ;;  %v1901_v24 = vadd.f32 %v1897_v19, %v1892_v16  ;;  %v1902_v26 = vadd.f32 %v1897_v19, %v1893_v17 }
 0x46a   :  { %v1903_v27 = vmax.f32 %v1899_v20, 0.0  ;;  %v1904_v29 = vmax.f32 %v1900_v22, 0.0  ;;  %v1905_v30 = vmax.f32 %v1901_v24, 0.0  ;;  %v1906_v31 = vmax.f32 %v1902_v26, 0.0 }
 0x46c   :  { %v3845_v33 = vpack.c.bf16 %v1904_v29, %v1903_v27  ;;  %v3846_v34 = vpack.c.bf16 %v1906_v31, %v1905_v30 }
 0x46e   :  { %1915 = vst [vmem:[#allocation2 + $0x4] sm:$0x33] %v3845_v33  ;;  %1924 = vst [vmem:[#allocation2 + $0x10] sm:$0x33] %v3846_v34 }
 0x475   :  { %v2461_v32 = vld [vmem:[#allocation2 + $0x4] sm:$0x33]  ;;  %v4669_v23 = vld [vmem:[#allocation2 + $0xc] sm:$0x33]  ;;  %v2270_v6 = vld [vmem:[#allocation2 + $0x14] sm:$0x33] }
 0x476   :  { %v1925_v21 = vld [vmem:[#allocation2] sm:$0x33]  ;;  %v3775_v13 = vcombine.high %v2461_v32, %v2461_v32  ;;  %v3774_v37 = vcombine.low %v2461_v32, %v2461_v32  ;;  %v1926_v41 = vld [vmem:[#allocation2 + $0x8] sm:$0x33]  ;;  %v3777_v25 = vcombine.high %v4669_v23, %v4669_v23  ;;  %v1927_v46 = vld [vmem:[#allocation2 + $0x10] sm:$0x33]  ;;  %v3766_v8 = vcombine.low %v2270_v6, %v2270_v6 }
 0x477   :  { %v3745_v36 = vcombine.low %v1925_v21, %v1925_v21  ;;  %v3747_v44 = vcombine.low %v1926_v41, %v1926_v41  ;;  %v3746_v45 = vcombine.high %v1925_v21, %v1925_v21  ;;  %v3749_v47 = vcombine.low %v1927_v46, %v1927_v46  ;;  %v2268_v52 = vld [vmem:[#allocation2 + $0x4] sm:$0x33]  ;;  %v2269_v56 = vld [vmem:[#allocation2 + $0xc] sm:$0x33]  ;;  %v2994_v16 = vld [vmem:[#allocation2 + $0x14] sm:$0x33] }
 0x478   :  { %3779 = vmatprep.subr.msk.bf16.mxu1 %vm1975_vm12, %v3775_v13  ;;  %v2491_v43 = vsel %vm1975_vm12, %v3774_v37, 0  ;;  %v3748_v35 = vcombine.high %v1926_v41, %v1926_v41  ;;  %v3750_v51 = vcombine.high %v1927_v46, %v1927_v46  ;;  %v3763_v53 = vcombine.high %v2268_v52, %v2268_v52  ;;  %v2457_v54 = vld [vmem:[#allocation2] sm:$0x33]  ;;  %v2459_v58 = vld [vmem:[#allocation2 + $0x10] sm:$0x33] }
 0x479   :  { %2112 = vrot.lane.b32.xlu0 %v3745_v36, %s4199_s28  ;;  %1954 = vrot.lane.b32.xlu1 %v3745_v36, %s4196_s26  ;;  %v3785_v55 = vcombine.high %v2457_v54, %v2457_v54  ;;  %v3765_v57 = vcombine.high %v2269_v56, %v2269_v56  ;;  %v3788_v59 = vcombine.low %v2459_v58, %v2459_v58  ;;  %v2800_v2 = vld [vmem:[#allocation2 + $0xc] sm:$0x33]  ;;  %v2799_v5 = vld [vmem:[#allocation2 + $0x4] sm:$0x33]  ;;  %v2801_v22 = vld [vmem:[#allocation2 + $0x14] sm:$0x33] }
 0x47a   :  { %2506 = vmatpush1.bf16.msra.mxu1 %v2491_v43  ;;  %v3762_v60 = vcombine.low %v2268_v52, %v2268_v52  ;;  %v3764_v61 = vcombine.low %v2269_v56, %v2269_v56  ;;  %v3789_v63 = vcombine.high %v2459_v58, %v2459_v58  ;;  %v3784_v0 = vcombine.low %v2457_v54, %v2457_v54  ;;  %v2458_v28 = vld [vmem:[#allocation2 + $0x8] sm:$0x33]  ;;  %v2988_v27 = vld [vmem:[#allocation2] sm:$0x33]  ;;  %v2990_v33 = vld [vmem:[#allocation2 + $0x10] sm:$0x33]  ;;  %v1938_v54 = vpop.permute.xlu1 %1937 }
 0x47b   :  { %3781 = vmatprep.subr.msk.bf16.mxu1 %vm1975_vm12, %v3777_v25  ;;  %v3799_v3 = vcombine.high %v2800_v2, %v2800_v2  ;;  %v3786_v4 = vcombine.low %v2458_v28, %v2458_v28  ;;  %v3797_v49 = vcombine.high %v2799_v5, %v2799_v5  ;;  %v2992_v11 = vld [vmem:[#allocation2 + $0x4] sm:$0x33]  ;;  %v3787_v12 = vcombine.high %v2458_v28, %v2458_v28  ;;  %v2993_v20 = vld [vmem:[#allocation2 + $0xc] sm:$0x33] }
 0x47c   :  { %v3809_v48 = vcombine.high %v2992_v11, %v2992_v11  ;;  %v3767_v15 = vcombine.high %v2270_v6, %v2270_v6  ;;  %v3812_v17 = vcombine.low %v2994_v16, %v2994_v16  ;;  %v3798_v19 = vcombine.low %v2800_v2, %v2800_v2  ;;  %v3349_v21 = vld [vmem:[#allocation2 + $0x4] sm:$0x33]  ;;  %v3350_v37 = vld [vmem:[#allocation2 + $0xc] sm:$0x33] }
 0x47d   :  { %2116 = vrot.lane.b32.xlu0 %v3747_v44, %s4199_s28  ;;  %1956 = vrot.lane.b32.xlu1 %v3746_v45, %s4196_s26  ;;  %v3811_v24 = vcombine.high %v2993_v20, %v2993_v20  ;;  %v3800_v26 = vcombine.low %v2801_v22, %v2801_v22  ;;  %v3820_v29 = vcombine.high %v2988_v27, %v2988_v27  ;;  %v2989_v46 = vld [vmem:[#allocation2 + $0x8] sm:$0x33] }
 0x47e   :  { %v3796_v30 = vcombine.low %v2799_v5, %v2799_v5  ;;  %v3808_v31 = vcombine.low %v2992_v11, %v2992_v11  ;;  %v3824_v34 = vcombine.high %v2990_v33, %v2990_v33  ;;  %v3810_v32 = vcombine.low %v2993_v20, %v2993_v20 }
 0x47f   :  { %v3831_v13 = vcombine.low %v3349_v21, %v3349_v21  ;;  %v3801_v36 = vcombine.high %v2801_v22, %v2801_v22  ;;  %v3833_v41 = vcombine.low %v3350_v37, %v3350_v37  ;;  %v3813_v43 = vcombine.high %v2994_v16, %v2994_v16 }
 0x480   :  { %v3834_v25 = vcombine.high %v3350_v37, %v3350_v37  ;;  %v3822_v52 = vcombine.high %v2989_v46, %v2989_v46 }
 0x481   :  { %2120 = vrot.lane.b32.xlu0 %v3749_v47, %s4199_s28  ;;  %1958 = vrot.lane.b32.xlu1 %v3747_v44, %s4196_s26  ;;  %v3819_v44 = vcombine.low %v2988_v27, %v2988_v27 }
 0x485   :  { %2280 = vrot.lane.b32.xlu0 %v4685_v50, %s4197_s27  ;;  %1960 = vrot.lane.b32.xlu1 %v3748_v35, %s4196_s26  ;;  %s4217_s27 = smov 108  }
 0x489   :  { %2122 = vrot.lane.b32.xlu0 %v3750_v51, %s4199_s28  ;;  %1962 = vrot.lane.b32.xlu1 %v3749_v47, %s4196_s26 }
 0x48d   :  { %2626 = vrot.lane.b32.xlu0 %v4685_v50, %s4215_s30  ;;  %1964 = vrot.lane.b32.xlu1 %v3750_v51, %s4196_s26  ;;  %v3823_v51 = vcombine.low %v2990_v33, %v2990_v33 }
 0x491   :  { %2299 = vrot.lane.b32.xlu0 %v3763_v53, %s4200_s29  ;;  %2114 = vrot.lane.b32.xlu1 %v3746_v45, %s4199_s28  ;;  %v3351_v45 = vld [vmem:[#allocation2 + $0x14] sm:$0x33]  ;;  %v3832_v53 = vcombine.high %v3349_v21, %v3349_v21 }
 0x492   :  { %v3836_v47 = vcombine.high %v3351_v45, %v3351_v45 }
 0x495   :  { %2645 = vrot.lane.b32.xlu0 %v3785_v55, %s4203_s3  ;;  %2472 = vrot.lane.b32.xlu1 %v4685_v50, %s4205_s12 }
 0x499   :  { %2303 = vrot.lane.b32.xlu0 %v3765_v57, %s4200_s29  ;;  %2118 = vrot.lane.b32.xlu1 %v3748_v35, %s4199_s28  ;;  %v3821_v35 = vcombine.low %v2989_v46, %v2989_v46  ;;  %v3835_v57 = vcombine.low %v3351_v45, %v3351_v45 }
 0x49d   :  { %2651 = vrot.lane.b32.xlu0 %v3788_v59, %s4203_s3  ;;  %2297 = vrot.lane.b32.xlu1 %v3762_v60, %s4200_s29 }
 0x4a1   :  { %2811 = vrot.lane.b32.xlu0 %v4685_v50, %s4216_s4  ;;  %2301 = vrot.lane.b32.xlu1 %v3764_v61, %s4200_s29 }
 0x4a5   :  { %2653 = vrot.lane.b32.xlu0 %v3789_v63, %s4203_s3  ;;  %2643 = vrot.lane.b32.xlu1 %v3784_v0, %s4203_s3 }
 0x4a9   :  { %2834 = vrot.lane.b32.xlu0 %v3799_v3, %s4205_s12  ;;  %2647 = vrot.lane.b32.xlu1 %v3786_v4, %s4203_s3 }
 0x4ad   :  { %2830 = vrot.lane.b32.xlu0 %v3797_v49, %s4205_s12  ;;  %2305 = vrot.lane.b32.xlu1 %v3766_v8, %s4200_s29 }
 0x4b1   :  { %3022 = vrot.lane.b32.xlu0 %v3809_v48, %s4207_s14  ;;  %2649 = vrot.lane.b32.xlu1 %v3787_v12, %s4203_s3 }
 0x4b5   :  { %3003 = vrot.lane.b32.xlu0 %v4685_v50, %s4217_s27  ;;  %2307 = vrot.lane.b32.xlu1 %v3767_v15, %s4200_s29 }
 0x4b9   :  { %3028 = vrot.lane.b32.xlu0 %v3812_v17, %s4207_s14  ;;  %2832 = vrot.lane.b32.xlu1 %v3798_v19, %s4205_s12  ;;  %v3776_v19 = vcombine.low %v4669_v23, %v4669_v23 }
 0x4bd   :  { %3026 = vrot.lane.b32.xlu0 %v3811_v24, %s4207_s14  ;;  %2836 = vrot.lane.b32.xlu1 %v3800_v26, %s4205_s12  ;;  %v2497_v26 = vsel %vm1975_vm12, %v3776_v19, 0 }
 0x4c1   :  { %3195 = vrot.lane.b32.xlu0 %v3820_v29, %s4209_s16  ;;  %2828 = vrot.lane.b32.xlu1 %v3796_v30, %s4205_s12 }
 0x4c5   :  { %3176 = vrot.lane.b32.xlu0 %v4685_v50, %s4204_s11  ;;  %3020 = vrot.lane.b32.xlu1 %v3808_v31, %s4207_s14  ;;  %v4189_v31 = vld [vmem:[#allocation2 + $0x14] ss:$0 sps:$4 sm:$0x33]  }
 0x4c6   :  { %v2503_v21 = vsel %vm1975_vm12, %v4189_v31, 0 }
 0x4c9   :  { %3203 = vrot.lane.b32.xlu0 %v3824_v34, %s4209_s16  ;;  %3024 = vrot.lane.b32.xlu1 %v3810_v32, %s4207_s14 }
 0x4cd   :  { %3378 = vrot.lane.b32.xlu0 %v3831_v13, %s4210_s17  ;;  %2838 = vrot.lane.b32.xlu1 %v3801_v36, %s4205_s12 }
 0x4d1   :  { %3382 = vrot.lane.b32.xlu0 %v3833_v41, %s4210_s17  ;;  %3030 = vrot.lane.b32.xlu1 %v3813_v43, %s4207_s14 }
 0x4d5   :  { %3384 = vrot.lane.b32.xlu0 %v3834_v25, %s4210_s17  ;;  %3193 = vrot.lane.b32.xlu1 %v3819_v44, %s4209_s16 }
 0x4d9   :  { %3388 = vrot.lane.b32.xlu0 %v3836_v47, %s4210_s17  ;;  %3197 = vrot.lane.b32.xlu1 %v3821_v35, %s4209_s16 }
 0x4dd   :  { %3201 = vrot.lane.b32.xlu1 %v3823_v51, %s4209_s16 }
 0x4e1   :  { %3199 = vrot.lane.b32.xlu1 %v3822_v52, %s4209_s16 }
 0x4e5   :  { %3380 = vrot.lane.b32.xlu1 %v3832_v53, %s4210_s17 }
 0x4e9   :  { %3361 = vrot.lane.b32.xlu1 %v4685_v50, %s4201_s9 }
 0x4eb   :  { %v2113_v55 = vpop.permute.xlu0 %2112  ;;  %v1955_v56 = vpop.permute.xlu1 %1954 }
 0x4ed   :  { %3386 = vrot.lane.b32.xlu1 %v3835_v57, %s4210_s17 }
 0x4ef   :  { %v2117_v58 = vpop.permute.xlu0 %2116  ;;  %v1957_v59 = vpop.permute.xlu1 %1956 }
 0x4f0   :  { %v1966_v60 = vsel %vm205_vm2, %v1955_v56, %v1957_v59 }
 0x4f1   :  { %v1977_v2 = vsel %vm1975_vm12, %v1966_v60, 0 }
 0x4f3   :  { %v4741_v61 = vpop.permute.xlu0 %2120  ;;  %v1959_v63 = vpop.permute.xlu1 %1958 }
 0x4f4   :  { %v1967_v0 = vsel %vm205_vm2, %v1957_v59, %v1959_v63 }
 0x4f5   :  { %3751 = vmatprep.subr.msk.bf16.mxu0 %vm1975_vm12, %v1967_v0 }
 0x4f6   :  { %1992 = vmatpush1.bf16.msra.mxu0 %v1977_v2 }
 0x4f7   :  { %v4746_v50 = vpop.permute.xlu0 %2280  ;;  %v1961_v28 = vpop.permute.xlu1 %1960 }
 0x4f8   :  { %v1968_v3 = vsel %vm205_vm2, %v1959_v63, %v1961_v28 }
 0x4f9   :  { %3752 = vmatmul.mubr.msk.bf16.vlgmr.msra.gmra.mrb[36].mxu0 %vm1971_vm13, %v1938_v54  ;;  %v1983_v49 = vsel %vm1975_vm12, %v1968_v3, 0 }
 0x4fa   :  { %2064 = vmatprep.mubr.bf16.mxu0 %v4194_v1 }
 0x4fb   :  { %v2123_v4 = vpop.permute.xlu0 %2122  ;;  %v1963_v5 = vpop.permute.xlu1 %1962 }
 0x4fc   :  { %v1969_v6 = vsel %vm205_vm2, %v1961_v28, %v1963_v5  ;;  %v2128_v41 = vsel %vm364_vm4, %v4741_v61, %v2123_v4 }
 0x4fd   :  { %3753 = vmatprep.subr.msk.bf16.mxu0 %vm1975_vm12, %v1969_v6  ;;  %v2145_v44 = vsel %vm1975_vm12, %v2128_v41, 0 }
 0x4fe   :  { %2033 = vmatpush1.bf16.msra.mxu0 %v1983_v49 }
 0x4ff   :  { %v4754_v8 = vpop.permute.xlu0 %2626  ;;  %v1965_v11 = vpop.permute.xlu1 %1964  ;;  %3937 = vmatprep.subr.bf16.mxu0 %v4198_v42 }
 0x500   :  { %v1970_v48 = vsel %vm205_vm2, %v1963_v5, %v1965_v11 }
 0x501   :  { %v1989_v12 = vsel %vm1975_vm12, %v1970_v48, 0  ;;  %3754 = vmatmul.mubr.msk.bf16.vlgmr.msra.gmra.mrb[40].mxu0 %vm1971_vm13, %v1938_v54 }
 0x502   :  { %3938 = vmatpush3.bf16.msra.mxu0 %v1989_v12  ;;  %3939 = vmatprep.mubr.msk.bf16.mxu0 %vm4212_vm5, %v4198_v42 }
 0x503   :  { %v2300_v15 = vpop.permute.xlu0 %2299  ;;  %v2115_v16 = vpop.permute.xlu1 %2114 }
 0x504   :  { %v2125_v17 = vsel %vm364_vm4, %v2115_v16, %v2117_v58  ;;  %v2124_v20 = vsel %vm364_vm4, %v2113_v55, %v2115_v16 }
 0x505   :  { %3756 = vmatprep.subr.msk.bf16.mxu0 %vm1975_vm12, %v2125_v17  ;;  %v2133_v27 = vsel %vm1975_vm12, %v2124_v20, 0 }
 0x507   :  { %v2646_v22 = vpop.permute.xlu0 %2645  ;;  %v2473_v24 = vpop.permute.xlu1 %2472 }
 0x508   :  { %3780 = vmatmul.mubr.msk.bf16.vlgmr.msra.gmra.mrb[28].mxu1 %vm1971_vm13, %v2473_v24 }
 0x509   :  { %2547 = vmatpush1.bf16.msra.mxu1 %v2497_v26  ;;  %3940 = vmatmul.mubr.msk.bf16.vlgmr.msra.gmra.mrb[44].mxu0 %vm1971_vm13, %v1938_v54 }
 0x50a   :  { %2148 = vmatpush1.bf16.msra.mxu0 %v2133_v27  ;;  %2578 = vmatprep.mubr.bf16.mxu1 %v4194_v1 }
 0x50b   :  { %v2304_v29 = vpop.permute.xlu0 %2303  ;;  %v2119_v23 = vpop.permute.xlu1 %2118  ;;  %3955 = vmatprep.subr.bf16.mxu1 %v4198_v42  ;;  %2179 = vmatprep.mubr.bf16.mxu0 %v4194_v1 }
 0x50c   :  { %v2127_v30 = vsel %vm364_vm4, %v2119_v23, %v4741_v61  ;;  %v2126_v33 = vsel %vm364_vm4, %v2117_v58, %v2119_v23 }
 0x50d   :  { %3758 = vmatprep.subr.msk.bf16.mxu0 %vm1975_vm12, %v2127_v30  ;;  %v2139_v13 = vsel %vm1975_vm12, %v2126_v33, 0 }
 0x50f   :  { %v2652_v34 = vpop.permute.xlu0 %2651  ;;  %v2298_v32 = vpop.permute.xlu1 %2297 }
 0x510   :  { %3782 = vmatmul.mubr.msk.bf16.vlgmr.msra.gmra.mrb[32].mxu1 %vm1971_vm13, %v2473_v24  ;;  %v2309_v53 = vsel %vm550_vm6, %v2298_v32, %v2300_v15 }
 0x511   :  { %3956 = vmatpush3.bf16.msra.mxu1 %v2503_v21  ;;  %3757 = vmatmul.mubr.msk.bf16.vlgmr.msra.gmra.mrb[36].mxu0 %vm1971_vm13, %v4664_v9  ;;  %v2318_v57 = vsel %vm1975_vm12, %v2309_v53, 0 }
 0x512   :  { %2189 = vmatpush1.bf16.msra.mxu0 %v2139_v13  ;;  %3957 = vmatprep.mubr.msk.bf16.mxu1 %vm4212_vm5, %v4198_v42 }
 0x513   :  { %v4783_v36 = vpop.permute.xlu0 %2811  ;;  %v2302_v37 = vpop.permute.xlu1 %2301  ;;  %2220 = vmatprep.mubr.bf16.mxu0 %v4194_v1  ;;  %3943 = vmatprep.subr.bf16.mxu0 %v4198_v42 }
 0x514   :  { %v2310_v45 = vsel %vm550_vm6, %v2300_v15, %v2302_v37 }
 0x517   :  { %v2654_v43 = vpop.permute.xlu0 %2653  ;;  %v2644_v25 = vpop.permute.xlu1 %2643 }
 0x518   :  { %3958 = vmatmul.mubr.msk.bf16.vlgmr.msra.gmra.mrb[36].mxu1 %vm1971_vm13, %v2473_v24  ;;  %v2655_v46 = vsel %vm897_vm7, %v2644_v25, %v2646_v22  ;;  %v2659_v0 = vsel %vm897_vm7, %v2652_v34, %v2654_v43 }
 0x519   :  { %3759 = vmatmul.mubr.msk.bf16.vlgmr.msra.gmra.mrb[40].mxu0 %vm1971_vm13, %v4664_v9  ;;  %2710 = vmatprep.mubr.bf16.mxu1 %v4194_v1  ;;  %v2664_v52 = vsel %vm1975_vm12, %v2655_v46, 0  ;;  %v2676_v3 = vsel %vm1975_vm12, %v2659_v0, 0 }
 0x51a   :  { %3944 = vmatpush3.bf16.msra.mxu0 %v2145_v44  ;;  %3945 = vmatprep.mubr.msk.bf16.mxu0 %vm4212_vm5, %v4198_v42 }
 0x51b   :  { %v2835_v47 = vpop.permute.xlu0 %2834  ;;  %3768 = vmatprep.subr.msk.bf16.mxu0 %vm1975_vm12, %v2310_v45  ;;  %v2648_v35 = vpop.permute.xlu1 %2647 }
 0x51c   :  { %v2656_v51 = vsel %vm897_vm7, %v2646_v22, %v2648_v35 }
 0x51d   :  { %3790 = vmatprep.subr.msk.bf16.mxu1 %vm1975_vm12, %v2656_v51 }
 0x51e   :  { %2679 = vmatpush1.bf16.msra.mxu1 %v2664_v52 }
 0x51f   :  { %v2831_v54 = vpop.permute.xlu0 %2830  ;;  %v2306_v55 = vpop.permute.xlu1 %2305 }
 0x520   :  { %v2312_v56 = vsel %vm550_vm6, %v2304_v29, %v2306_v55 }
 0x521   :  { %3946 = vmatmul.mubr.msk.bf16.vlgmr.msra.gmra.mrb[44].mxu0 %vm1971_vm13, %v4664_v9  ;;  %3791 = vmatmul.mubr.msk.bf16.vlgmr.msra.gmra.mrb[40].mxu1 %vm1971_vm13, %v4754_v8  ;;  %v2311_v9 = vsel %vm550_vm6, %v2302_v37, %v2304_v29 }
 0x522   :  { %2333 = vmatpush1.bf16.msra.mxu0 %v2318_v57  ;;  %2364 = vmatprep.mubr.bf16.mxu0 %v4194_v1  ;;  %v2324_v28 = vsel %vm1975_vm12, %v2311_v9, 0 }
 0x523   :  { %3770 = vmatprep.subr.msk.bf16.mxu0 %vm1975_vm12, %v2312_v56  ;;  %v2650_v58 = vpop.permute.xlu1 %2649  ;;  %2751 = vmatprep.mubr.bf16.mxu1 %v4194_v1  ;;  %v3023_v61 = vpop.permute.xlu0 %3022 }
 0x524   :  { %v2657_v59 = vsel %vm897_vm7, %v2648_v35, %v2650_v58  ;;  %v2658_v60 = vsel %vm897_vm7, %v2650_v58, %v2652_v34 }
 0x525   :  { %v2670_v63 = vsel %vm1975_vm12, %v2657_v59, 0  ;;  %3792 = vmatprep.subr.msk.bf16.mxu1 %vm1975_vm12, %v2658_v60 }
 0x526   :  { %2720 = vmatpush1.bf16.msra.mxu1 %v2670_v63 }
 0x527   :  { %v2308_v2 = vpop.permute.xlu1 %2307  ;;  %3961 = vmatprep.subr.bf16.mxu1 %v4198_v42  ;;  %v4827_v4 = vpop.permute.xlu0 %3003 }
 0x528   :  { %v2313_v49 = vsel %vm550_vm6, %v2306_v55, %v2308_v2 }
 0x529   :  { %3769 = vmatmul.mubr.msk.bf16.vlgmr.msra.gmra.mrb[36].mxu0 %vm1971_vm13, %v4746_v50  ;;  %3793 = vmatmul.mubr.msk.bf16.vlgmr.msra.gmra.mrb[44].mxu1 %vm1971_vm13, %v4754_v8  ;;  %v2330_v12 = vsel %vm1975_vm12, %v2313_v49, 0 }
 0x52a   :  { %2374 = vmatpush1.bf16.msra.mxu0 %v2324_v28  ;;  %3962 = vmatpush3.bf16.msra.mxu1 %v2676_v3 }
 0x52b   :  { %v2833_v5 = vpop.permute.xlu1 %2832  ;;  %2405 = vmatprep.mubr.bf16.mxu0 %v4194_v1  ;;  %3949 = vmatprep.subr.bf16.mxu0 %v4198_v42  ;;  %v3029_v15 = vpop.permute.xlu0 %3028 }
 0x52c   :  { %v2841_v6 = vsel %vm1083_vm8, %v2831_v54, %v2833_v5  ;;  %3963 = vmatprep.mubr.msk.bf16.mxu1 %vm4212_vm5, %v4198_v42  ;;  %v2842_v20 = vsel %vm1083_vm8, %v2833_v5, %v2835_v47 }
 0x52d   :  { %3802 = vmatprep.subr.msk.bf16.mxu1 %vm1975_vm12, %v2841_v6 }
 0x52f   :  { %v2837_v11 = vpop.permute.xlu1 %2836  ;;  %v3027_v22 = vpop.permute.xlu0 %3026 }
 0x530   :  { %v2843_v48 = vsel %vm1083_vm8, %v2835_v47, %v2837_v11  ;;  %v3035_v34 = vsel %vm1276_vm9, %v3027_v22, %v3029_v15 }
 0x531   :  { %3771 = vmatmul.mubr.msk.bf16.vlgmr.msra.gmra.mrb[40].mxu0 %vm1971_vm13, %v4746_v50  ;;  %3964 = vmatmul.mubr.msk.bf16.vlgmr.msra.gmra.mrb[48].mxu1 %vm1971_vm13, %v4754_v8  ;;  %v2855_v8 = vsel %vm1975_vm12, %v2842_v20, 0 }
 0x532   :  { %3950 = vmatpush3.bf16.msra.mxu0 %v2330_v12  ;;  %3951 = vmatprep.mubr.msk.bf16.mxu0 %vm4212_vm5, %v4198_v42 }
 0x533   :  { %3804 = vmatprep.subr.msk.bf16.mxu0 %vm1975_vm12, %v2843_v48  ;;  %v2829_v16 = vpop.permute.xlu1 %2828  ;;  %2895 = vmatprep.mubr.bf16.mxu1 %v4194_v1  ;;  %v3196_v29 = vpop.permute.xlu0 %3195 }
 0x534   :  { %v2840_v17 = vsel %vm1083_vm8, %v2829_v16, %v2831_v54 }
 0x535   :  { %v2849_v19 = vsel %vm1975_vm12, %v2840_v17, 0 }
 0x536   :  { %2864 = vmatpush1.bf16.msra.mxu1 %v2849_v19 }
 0x537   :  { %v3021_v24 = vpop.permute.xlu1 %3020  ;;  %3967 = vmatprep.subr.bf16.mxu1 %v4198_v42  ;;  %v3177_v21 = vpop.permute.xlu0 %3176 }
 0x538   :  { %v3032_v23 = vsel %vm1276_vm9, %v3021_v24, %v3023_v61 }
 0x539   :  { %3952 = vmatmul.mubr.msk.bf16.vlgmr.msra.gmra.mrb[44].mxu0 %vm1971_vm13, %v4746_v50  ;;  %3803 = vmatmul.mubr.msk.bf16.vlgmr.msra.gmra.mrb[52].mxu1 %vm1971_vm13, %v4783_v36  ;;  %v3041_v31 = vsel %vm1975_vm12, %v3032_v23, 0 }
 0x53a   :  { %2905 = vmatpush1.bf16.msra.mxu0 %v2855_v8  ;;  %2936 = vmatprep.mubr.bf16.mxu0 %v4194_v1 }
 0x53b   :  { %v3025_v26 = vpop.permute.xlu1 %3024  ;;  %3969 = vmatprep.mubr.msk.bf16.mxu1 %vm4212_vm5, %v4198_v42  ;;  %v3204_v25 = vpop.permute.xlu0 %3203 }
 0x53c   :  { %v3033_v27 = vsel %vm1276_vm9, %v3023_v61, %v3025_v26  ;;  %v3034_v32 = vsel %vm1276_vm9, %v3025_v26, %v3027_v22 }
 0x53d   :  { %3814 = vmatprep.subr.msk.bf16.mxu0 %vm1975_vm12, %v3033_v27  ;;  %v3047_v37 = vsel %vm1975_vm12, %v3034_v32, 0 }
 0x53f   :  { %v2839_v30 = vpop.permute.xlu1 %2838  ;;  %v3379_v47 = vpop.permute.xlu0 %3378 }
 0x540   :  { %v2844_v50 = vsel %vm1083_vm8, %v2837_v11, %v2839_v30 }
 0x541   :  { %v2861_v33 = vsel %vm1975_vm12, %v2844_v50, 0  ;;  %3805 = vmatmul.mubr.msk.bf16.vlgmr.msra.gmra.mrb[48].mxu0 %vm1971_vm13, %v4783_v36 }
 0x542   :  { %3056 = vmatpush1.bf16.msra.mxu0 %v3041_v31  ;;  %3968 = vmatpush3.bf16.msra.mxu1 %v2861_v33 }
 0x543   :  { %3816 = vmatprep.subr.msk.bf16.mxu1 %vm1975_vm12, %v3035_v34  ;;  %v3031_v13 = vpop.permute.xlu1 %3030  ;;  %3087 = vmatprep.mubr.bf16.mxu0 %v4194_v1  ;;  %v3383_v55 = vpop.permute.xlu0 %3382 }
 0x544   :  { %3973 = vmatprep.subr.bf16.mxu0 %v4198_v42  ;;  %v3036_v41 = vsel %vm1276_vm9, %v3029_v15, %v3031_v13 }
 0x545   :  { %3970 = vmatmul.mubr.msk.bf16.vlgmr.msra.gmra.mrb[56].mxu1 %vm1971_vm13, %v4783_v36  ;;  %v3053_v44 = vsel %vm1975_vm12, %v3036_v41, 0 }
 0x546   :  { %3097 = vmatpush1.bf16.msra.mxu1 %v3047_v37  ;;  %3128 = vmatprep.mubr.bf16.mxu1 %v4194_v1 }
 0x547   :  { %v3194_v43 = vpop.permute.xlu1 %3193  ;;  %v3385_v61 = vpop.permute.xlu0 %3384 }
 0x548   :  { %v3205_v36 = vsel %vm1450_vm10, %v3194_v43, %v3196_v29  ;;  %v3392_v9 = vsel %vm1636_vm11, %v3383_v55, %v3385_v61 }
 0x549   :  { %3815 = vmatmul.mubr.msk.bf16.vlgmr.msra.gmra.mrb[52].mxu0 %vm1971_vm13, %v4827_v4  ;;  %v3214_v51 = vsel %vm1975_vm12, %v3205_v36, 0  ;;  %v3405_v3 = vsel %vm1975_vm12, %v3392_v9, 0 }
 0x54a   :  { %3974 = vmatpush3.bf16.msra.mxu0 %v3053_v44  ;;  %3975 = vmatprep.mubr.msk.bf16.mxu0 %vm4212_vm5, %v4198_v42 }
 0x54b   :  { %v3198_v45 = vpop.permute.xlu1 %3197  ;;  %v3389_v5 = vpop.permute.xlu0 %3388 }
 0x54c   :  { %v3206_v46 = vsel %vm1450_vm10, %v3196_v29, %v3198_v45 }
 0x54d   :  { %3817 = vmatmul.mubr.msk.bf16.vlgmr.msra.gmra.mrb[60].mxu1 %vm1971_vm13, %v4827_v4  ;;  %3825 = vmatprep.subr.msk.bf16.mxu0 %vm1975_vm12, %v3206_v46 }
 0x54e   :  { %3301 = vmatprep.mubr.bf16.mxu1 %v4194_v1 }
 0x54f   :  { %v3202_v35 = vpop.permute.xlu1 %3201 }
 0x550   :  { %v3209_v57 = vsel %vm1450_vm10, %v3202_v35, %v3204_v25 }
 0x551   :  { %3976 = vmatmul.mubr.msk.bf16.vlgmr.msra.gmra.mrb[56].mxu0 %vm1971_vm13, %v4827_v4  ;;  %v3226_v60 = vsel %vm1975_vm12, %v3209_v57, 0 }
 0x552   :  { %3229 = vmatpush1.bf16.msra.mxu0 %v3214_v51  ;;  %3260 = vmatprep.mubr.bf16.mxu0 %v4194_v1 }
 0x553   :  { %v3200_v52 = vpop.permute.xlu1 %3199  ;;  %3979 = vmatprep.subr.bf16.mxu0 %v4198_v42 }
 0x554   :  { %v3207_v53 = vsel %vm1450_vm10, %v3198_v45, %v3200_v52  ;;  %v3208_v54 = vsel %vm1450_vm10, %v3200_v52, %v3202_v35 }
 0x555   :  { %v3220_v56 = vsel %vm1975_vm12, %v3207_v53, 0  ;;  %3827 = vmatprep.subr.msk.bf16.mxu1 %vm1975_vm12, %v3208_v54 }
 0x556   :  { %3270 = vmatpush1.bf16.msra.mxu1 %v3220_v56 }
 0x557   :  { %v3381_v58 = vpop.permute.xlu1 %3380 }
 0x558   :  { %v3391_v59 = vsel %vm1636_vm11, %v3381_v58, %v3383_v55  ;;  %v3390_v0 = vsel %vm1636_vm11, %v3379_v47, %v3381_v58 }
 0x559   :  { %3826 = vmatmul.mubr.msk.bf16.vlgmr.msra.gmra.mrb[52].mxu0 %vm1971_vm13, %v3177_v21  ;;  %3828 = vmatmul.mubr.msk.bf16.vlgmr.msra.gmra.mrb[60].mxu1 %vm1971_vm13, %v3177_v21  ;;  %v3399_v4 = vsel %vm1975_vm12, %v3390_v0, 0 }
 0x55a   :  { %3980 = vmatpush3.bf16.msra.mxu0 %v3226_v60  ;;  %3981 = vmatprep.mubr.msk.bf16.mxu0 %vm4212_vm5, %v4198_v42 }
 0x55b   :  { %3837 = vmatprep.subr.msk.bf16.mxu0 %vm1975_vm12, %v3391_v59  ;;  %v3362_v63 = vpop.permute.xlu1 %3361  ;;  %3486 = vmatprep.mubr.bf16.mxu1 %v4194_v1 }
 0x55f   :  { %v3387_v2 = vpop.permute.xlu1 %3386 }
 0x560   :  { %v3393_v28 = vsel %vm1636_vm11, %v3385_v61, %v3387_v2  ;;  %v3394_v6 = vsel %vm1636_vm11, %v3387_v2, %v3389_v5 }
 0x561   :  { %3982 = vmatmul.mubr.msk.bf16.vlgmr.msra.gmra.mrb[56].mxu0 %vm1971_vm13, %v3177_v21  ;;  %3839 = vmatprep.subr.msk.bf16.mxu1 %vm1975_vm12, %v3393_v28  ;;  %v3411_v49 = vsel %vm1975_vm12, %v3394_v6, 0 }
 0x562   :  { %3414 = vmatpush1.bf16.msra.mxu0 %v3399_v4  ;;  %3455 = vmatpush1.bf16.msra.mxu1 %v3405_v3 }
 0x563   :  { %3445 = vmatprep.mubr.bf16.mxu0 %v4194_v1  ;;  %3985 = vmatprep.subr.bf16.mxu0 %v4198_v42 }
 0x565   :  { %3840 = vmatmul.mubr.msk.bf16.vlgmr.msra.gmra.mrb[60].mxu1 %vm1971_vm13, %v3362_v63 }
 0x569   :  { %3838 = vmatmul.mubr.msk.bf16.vlgmr.msra.gmra.mrb[52].mxu0 %vm1971_vm13, %v3362_v63 }
 0x56a   :  { %3986 = vmatpush3.bf16.msra.mxu0 %v3411_v49  ;;  %3987 = vmatprep.mubr.msk.bf16.mxu0 %vm4212_vm5, %v4198_v42 }
 0x571   :  { %3988 = vmatmul.mubr.msk.bf16.vlgmr.msra.gmra.mrb[56].mxu0 %vm1971_vm13, %v3362_v63 }
 0x5db   :  { %v2539_v11 = vpop.f32.mrb[28].mxu1 }
 0x5dc   :  { %v2541_v48 = vpop.f32.mrb[29].mxu1 }
 0x5dd   :  { %v2543_v1 = vpop.f32.mrb[30].mxu1 }
 0x5de   :  { %v2544_v12 = vpop.f32.mrb[31].mxu1 }
 0x5e3   :  { %v2580_v15 = vpop.f32.mrb[32].mxu1 }
 0x5e4   :  { %v2581_v16 = vpop.f32.mrb[33].mxu1 }
 0x5e5   :  { %v2583_v17 = vpop.f32.mrb[34].mxu1 }
 0x5e6   :  { %v2584_v19 = vpop.f32.mrb[35].mxu1 }
 0x5eb   :  { %v2620_v20 = vpop.f32.mrb[36].mxu1 }
 0x5ec   :  { %v3959_v22 = vpop.f32.mrb[37].mxu1 }
 0x5ed   :  { %v2623_v24 = vpop.f32.mrb[38].mxu1 }
 0x5ee   :  { %v3960_v8 = vpop.f32.mrb[39].mxu1 }
 0x5f4   :  { %v2712_v26 = vpop.f32.mrb[40].mxu1 }
 0x5f5   :  { %v2713_v27 = vadd.f32 %v2712_v26, %v2539_v11  ;;  %v2714_v29 = vpop.f32.mrb[41].mxu1 }
 0x5f6   :  { %v2715_v23 = vadd.f32 %v2714_v29, %v2541_v48  ;;  %v2716_v30 = vpop.f32.mrb[42].mxu1 }
 0x5f7   :  { %v2717_v42 = vpop.f32.mrb[43].mxu1 }
 0x5fc   :  { %v2366_v50 = vpop.f32.mrb[36].mxu0  ;;  %v2753_v31 = vpop.f32.mrb[44].mxu1 }
 0x5fd   :  { %v2368_v33 = vpop.f32.mrb[37].mxu0  ;;  %v2754_v34 = vpop.f32.mrb[45].mxu1  ;;  %v3538_v54 = vmul.f32 %v2366_v50, %v4618_v39 }
 0x5fe   :  { %v2755_v32 = vadd.f32 %v2754_v34, %v2581_v16  ;;  %v2370_v21 = vpop.f32.mrb[38].mxu0  ;;  %v2756_v13 = vpop.f32.mrb[46].mxu1  ;;  %v3539_v58 = vmul.f32 %v2368_v33, %v4620_v40 }
 0x5ff   :  { %v2371_v37 = vpop.f32.mrb[39].mxu0  ;;  %v2757_v41 = vpop.f32.mrb[47].mxu1 }
 0x604   :  { %v2407_v43 = vpop.f32.mrb[40].mxu0  ;;  %v2793_v25 = vpop.f32.mrb[48].mxu1 }
 0x605   :  { %v2794_v44 = vadd.f32 %v2793_v25, %v2620_v20  ;;  %v2408_v45 = vpop.f32.mrb[41].mxu0  ;;  %v3965_v46 = vpop.f32.mrb[49].mxu1 }
 0x606   :  { %v2410_v36 = vpop.f32.mrb[42].mxu0  ;;  %v2796_v47 = vpop.f32.mrb[50].mxu1  ;;  %v3540_v4 = vmul.f32 %v2408_v45, %v4626_v62 }
 0x607   :  { %v2411_v35 = vpop.f32.mrb[43].mxu0  ;;  %v3966_v51 = vpop.f32.mrb[51].mxu1 }
 0x60c   :  { %v2447_v52 = vpop.f32.mrb[44].mxu0  ;;  %v2897_v53 = vpop.f32.mrb[52].mxu1 }
 0x60d   :  { %v2984_v55 = vadd.f32 %v2897_v53, %v2713_v27  ;;  %v3953_v56 = vpop.f32.mrb[45].mxu0  ;;  %v2899_v57 = vpop.f32.mrb[53].mxu1  ;;  %v3541_v48 = vmul.f32 %v2447_v52, %v4616_v38  ;;  %v4218_v52 = vmov 2  }
 0x60e   :  { %v2985_v59 = vadd.f32 %v2899_v57, %v2715_v23  ;;  %v2450_v60 = vpop.f32.mrb[46].mxu0  ;;  %v2901_v61 = vpop.f32.mrb[54].mxu1  ;;  %4115 = vset.pattern.permute.xlu1 %v4218_v52 }
 0x60f   :  { %v3542_v63 = vadd.f32 %v3538_v54, %v2984_v55  ;;  %v3954_v9 = vpop.f32.mrb[47].mxu0  ;;  %v2902_v0 = vpop.f32.mrb[55].mxu1 }
 0x610   :  { %v3543_v2 = vadd.f32 %v3539_v58, %v2985_v59  ;;  %v4219_v0 = vmov 3  }
 0x611   :  { %4117 = vset.pattern.permute.xlu0 %v4219_v0 }
 0x614   :  { %v2938_v28 = vpop.f32.mrb[48].mxu0 }
 0x615   :  { %v2939_v3 = vpop.f32.mrb[49].mxu0 }
 0x616   :  { %v2986_v5 = vadd.f32 %v2939_v3, %v2755_v32  ;;  %v2941_v6 = vpop.f32.mrb[50].mxu0 }
 0x617   :  { %v2942_v49 = vpop.f32.mrb[51].mxu0 }
 0x618   :  { %v3544_v39 = vadd.f32 %v3540_v4, %v2986_v5  ;;  %v2978_v11 = vpop.f32.mrb[56].mxu1 }
 0x619   :  { %v2987_v1 = vadd.f32 %v2978_v11, %v2794_v44  ;;  %v3971_v40 = vpop.f32.mrb[57].mxu1 }
 0x61a   :  { %v2981_v12 = vpop.f32.mrb[58].mxu1 }
 0x61b   :  { %v3545_v15 = vadd.f32 %v3541_v48, %v2987_v1  ;;  %v3972_v16 = vpop.f32.mrb[59].mxu1 }
 0x638   :  { %v3488_v17 = vpop.f32.mrb[60].mxu1 }
 0x639   :  { %v3489_v19 = vpop.f32.mrb[61].mxu1 }
 0x63a   :  { %v3548_v20 = vmul.f32 %v3489_v19, %v4632_v7  ;;  %v3491_v22 = vpop.f32.mrb[62].mxu1 }
 0x63b   :  { %v3492_v24 = vpop.f32.mrb[63].mxu1 }
 0x63c   :  { %v4926_v8 = vadd.f32 %v3548_v20, %v3544_v39  ;;  %v3447_v62 = vpop.f32.mrb[52].mxu0 }
 0x63d   :  { %v3546_v26 = vmul.f32 %v3447_v62, %v4637_v14  ;;  %v3449_v27 = vpop.f32.mrb[53].mxu0 }
 0x63e   :  { %v3547_v29 = vmul.f32 %v3449_v27, %v4639_v10  ;;  %v3451_v38 = vpop.f32.mrb[54].mxu0  ;;  %v3575_v10 = vmul.f32 %v4926_v8, %v4926_v8  ;;  %v3569_v43 = vsel %vm215_vm1, %v4926_v8, 0.0 }
 0x63f   :  { %v3550_v23 = vadd.f32 %v3546_v26, %v3542_v63  ;;  %v3452_v30 = vpop.f32.mrb[55].mxu0 }
 0x640   :  { %v3551_v42 = vadd.f32 %v3547_v29, %v3543_v2  ;;  %v3577_v46 = vsel %vm215_vm1, %v3575_v10, 0.0  ;;  %v3554_v2 = vld [vmem:[%s4964_s5] sm:$0xf] }
 0x641   :  { %v3555_v50 = vsel %vm215_vm1, %v3550_v23, 0.0  ;;  %v3561_v37 = vmul.f32 %v3550_v23, %v3550_v23 }
 0x642   :  { %v3556_v31 = vsel %vm215_vm1, %v3551_v42, 0.0  ;;  %v3562_v41 = vmul.f32 %v3551_v42, %v3551_v42 }
 0x643   :  { %v3557_v33 = vadd.f32 %v3556_v31, %v3555_v50  ;;  %v3563_v36 = vsel %vm215_vm1, %v3561_v37, 0.0 }
 0x644   :  { %v3528_v7 = vpop.f32.mrb[56].mxu0  ;;  %v3564_v47 = vsel %vm215_vm1, %v3562_v41, 0.0 }
 0x645   :  { %v3549_v34 = vmul.f32 %v3528_v7, %v4643_v18  ;;  %3558 = vadd.xlane.f32.xlu1 %v3557_v33  ;;  %v3989_v32 = vpop.f32.mrb[57].mxu0  ;;  %v3565_v51 = vadd.f32 %v3564_v47, %v3563_v36 }
 0x646   :  { %v3531_v21 = vpop.f32.mrb[58].mxu0 }
 0x647   :  { %v3553_v13 = vadd.f32 %v3549_v34, %v3545_v15  ;;  %v3990_v14 = vpop.f32.mrb[59].mxu0 }
 0x649   :  { %v3570_v25 = vsel %vm215_vm1, %v3553_v13, 0.0  ;;  %v3576_v44 = vmul.f32 %v3553_v13, %v3553_v13 }
 0x64a   :  { %v3571_v45 = vadd.f32 %v3570_v25, %v3569_v43 }
 0x64b   :  { %v3578_v18 = vsel %vm215_vm1, %v3576_v44, 0.0 }
 0x64c   :  { %3572 = vadd.xlane.f32.xlu0 %v3571_v45  ;;  %v3579_v35 = vadd.f32 %v3578_v18, %v3577_v46 }
 0x64e   :  { %3580 = vadd.xlane.f32.xlu1 %v3579_v35 }
 0x650   :  { %3566 = vadd.xlane.f32.xlu0 %v3565_v51 }
 0x6d2   :  { %v3559_v53 = vpop.xlane.xlu1 %3558 }
 0x6d9   :  { %v3573_v54 = vpop.xlane.xlu0 %3572 }
 0x6da   :  { %v3574_v55 = vadd.f32 %v3573_v54, %v3559_v53 }
 0x6db   :  { %v3581_v57 = vpop.xlane.xlu1 %3580 }
 0x6dc   :  { %v3583_v56 = vmul.f32 0.001953125, %v3574_v55 }
 0x6dd   :  { %v3567_v58 = vpop.xlane.xlu0 %3566 }
 0x6de   :  { %v3582_v59 = vadd.f32 %v3581_v57, %v3567_v58  ;;  %v3585_v60 = vmul.f32 %v3583_v56, %v3583_v56 }
 0x6e0   :  { %v3584_v61 = vmul.f32 0.001953125, %v3582_v59 }
 0x6e2   :  { %v3586_v63 = vsub.f32 %v3584_v61, %v3585_v60 }
 0x6e4   :  { %v3587_v9 = vadd.f32 1e-05, %v3586_v63 }
 0x6e6   :  { %4192 = vrsqrt.f32 %v3587_v9 }
 0x6f0   :  { %v4193_v28 = vpop.eup %4192 }
 0x6f1   :  { %v3589_v3 = vmul.f32 %v4193_v28, %v3554_v2 }
 0x6f3   :  { %3598 = vperm.xlu1 %4115, %v3589_v3   ;;  %v3590_v4 = vmul.f32 %v3589_v3, %v3583_v56 }
 0x6f5   :  { %3592 = vrot.lane.b32.xlu0 %v3590_v4, %s4196_s26 }
 0x6f7   :  { %4116 = vset.pattern.permute.xlu1 %v4219_v0 }
 0x767   :  { %v3593_v5 = vpop.permute.xlu0 %3592 }
 0x768   :  { %v3595_v6 = vsub.f32 %v3554_v2, %v3593_v5 }
 0x76a   :  { %3607 = vperm.xlu1 %4116, %v3595_v6  }
 0x772   :  { %v3599_v49 = vpop.permute.xlu1 %3598 }
 0x773   :  { %v3601_v39 = vmul.f32 %v3599_v49, %v3550_v23  ;;  %v3602_v11 = vmul.f32 %v3599_v49, %v3551_v42  ;;  %v3603_v48 = vmul.f32 %v3599_v49, %v4926_v8  ;;  %v3604_v1 = vmul.f32 %v3599_v49, %v3553_v13 }
 0x7e9   :  { %v3608_v40 = vpop.permute.xlu1 %3607 }
 0x7ea   :  { %v3610_v12 = vadd.f32 %v3608_v40, %v3601_v39  ;;  %v3611_v15 = vadd.f32 %v3608_v40, %v3602_v11  ;;  %v3612_v16 = vadd.f32 %v3608_v40, %v3603_v48  ;;  %v3613_v17 = vadd.f32 %v3608_v40, %v3604_v1 }
 0x7ec   :  { %v3614_v19 = vmax.f32 %v3610_v12, 0.0  ;;  %v3615_v20 = vmax.f32 %v3611_v15, 0.0  ;;  %v3616_v22 = vmax.f32 %v3612_v16, 0.0  ;;  %v3617_v24 = vmax.f32 %v3613_v17, 0.0 }
 0x7ee   :  { %3618 = vst [vmem:[%s4966_s7] sm:$0xf] %v3614_v19  ;;  %3619 = vst [vmem:[%s4966_s7 + $0x8] sm:$0xf] %v3615_v20  ;;  %v3622_v62 = vrot.slane %v3616_v22, 4  ;;  %v3623_v8 = vrot.slane %v3617_v24, 4 }
 0x7f0   :  { %3626 = vst [vmem:[%s4966_s7] sm:$0xf0] %v3622_v62  ;;  %3627 = vst [vmem:[%s4966_s7 + $0x8] sm:$0xf0] %v3623_v8 }

</bundles_post_ra>
